<compile_context>
chip_gen: v5e
topology: v5e:2x2
jax: 0.10.0
libtpu: 0.0.40
codegen_flags: <defaults>
</compile_context>

<pallas_src>
import math
import functools

import jax
import jax.numpy as jnp
from jax import lax
from jax.experimental import pallas as pl
from jax.experimental.pallas import tpu as pltpu

MASK_VALUE = -1e30  # finite "minus infinity": avoids NaN for fully-masked rows


# ----------------------------- helpers -----------------------------

def _pick_tile(dim, candidates):
    """Largest candidate that evenly divides `dim`, else the full dim."""
    for c in candidates:
        if dim % c == 0:
            return c
    return dim


def _round_up(x, m):
    return ((x + m - 1) // m) * m


def _compiler_params(dim_sem, est_bytes):
    """Explicit scoped-VMEM limit: above v5e's 16 MiB default, below v7x's
    64 MiB physical ceiling, with 2x headroom over the block estimate."""
    limit = int(min(48 * 2**20, max(24 * 2**20, 2 * est_bytes)))
    return pltpu.CompilerParams(dimension_semantics=dim_sem,
                                vmem_limit_bytes=limit)


# ----------------------------- fused linear kernels -----------------------------

def _linear_kernel(x_ref, w_ref, b_ref, o_ref, acc_ref, *, activation):
    """o = act(x @ w + b); grid = (M tiles, N tiles, K tiles), K innermost."""
    k = pl.program_id(2)

    @pl.when(k == 0)
    def _():
        acc_ref[...] = jnp.zeros_like(acc_ref)

    acc_ref[...] += jnp.dot(x_ref[...], w_ref[...],
                            preferred_element_type=jnp.float32)

    @pl.when(k == pl.num_programs(2) - 1)
    def _():
        y = acc_ref[...] + b_ref[...]
        if activation == "relu":
            y = jnp.maximum(y, 0.0)
        o_ref[...] = y.astype(o_ref.dtype)


def _linear_res_ln_kernel(x_ref, w_ref, b_ref, res_ref, g_ref, beta_ref,
                          o_ref, acc_ref, *, eps):
    """o = LayerNorm((x @ w + b) + res) * g + beta, fused in the matmul epilogue.
    Full-N blocks (LN reduces over the whole row); grid = (M tiles, K tiles)."""
    k = pl.program_id(1)

    @pl.when(k == 0)
    def _():
        acc_ref[...] = jnp.zeros_like(acc_ref)

    acc_ref[...] += jnp.dot(x_ref[...], w_ref[...],
                            preferred_element_type=jnp.float32)

    @pl.when(k == pl.num_programs(1) - 1)
    def _():
        n = o_ref.shape[-1]
        z = acc_ref[...] + b_ref[...] + res_ref[...]
        # two-pass (centered) variance: avoids E[x^2]-E[x]^2 cancellation
        mu = jnp.sum(z, axis=-1, keepdims=True) * (1.0 / n)
        d = z - mu
        var = jnp.sum(d * d, axis=-1, keepdims=True) * (1.0 / n)
        o_ref[...] = (d * lax.rsqrt(var + eps) * g_ref[...]
                      + beta_ref[...]).astype(o_ref.dtype)


def linear(x, w, b, *, activation="none", out_dtype=jnp.float32,
           residual=None, ln_gamma=None, ln_beta=None, eps=1e-5):
    """Fused linear: y = act(x @ w + b), optionally + residual then LayerNorm.

    x: (M, K) -> cast to bf16 for the MXU; w: (K, N) bf16 (pre-transposed at
    init); b/g/beta: (N,) f32.  Accumulation and epilogue are f32.
    """
    M, K = x.shape
    N = w.shape[1]

    x = x.astype(jnp.bfloat16)
    w = w.astype(jnp.bfloat16)

    # tm multiple of 16 (bf16 sublanes), biased to 256; tk biased >= 256.
    tm = _pick_tile(M, (256, 128, 64, 32, 16))
    tk = _pick_tile(K, (512, 256, 128))

    if residual is not None:
        # --- residual + LayerNorm epilogue: full-N blocks (N = d_model) ---
        bb = b.reshape(1, N).astype(jnp.float32)
        g = ln_gamma.reshape(1, N).astype(jnp.float32)
        beta = ln_beta.reshape(1, N).astype(jnp.float32)
        res = residual.astype(jnp.float32)
        est = (2 * tm * tk * 2 + 2 * tk * N * 2 + 6 * N * 4
               + 2 * tm * N * 4 + 2 * tm * N * 4 + tm * N * 4)
        return pl.pallas_call(
            functools.partial(_linear_res_ln_kernel, eps=eps),
            out_shape=jax.ShapeDtypeStruct((M, N), out_dtype),
            grid=(M // tm, K // tk),
            in_specs=[
                pl.BlockSpec((tm, tk), lambda i, k: (i, k)),
                pl.BlockSpec((tk, N), lambda i, k: (k, 0)),
                pl.BlockSpec((1, N), lambda i, k: (0, 0)),
                pl.BlockSpec((tm, N), lambda i, k: (i, 0)),
                pl.BlockSpec((1, N), lambda i, k: (0, 0)),
                pl.BlockSpec((1, N), lambda i, k: (0, 0)),
            ],
            out_specs=pl.BlockSpec((tm, N), lambda i, k: (i, 0)),
            scratch_shapes=[pltpu.VMEM((tm, N), jnp.float32)],
            compiler_params=_compiler_params(("parallel", "arbitrary"), est),
        )(x, w, bb, res, g, beta)

    # --- plain linear (+ optional ReLU): tile N, pad to lane-dense 128 ---
    N_pad = max(_round_up(N, 128), 128)
    if N_pad != N:
        # TODO(synk): for large non-128-multiple widths (e.g. odd vocab sizes)
        # pre-pad the weights at init time instead of per call.
        w = jnp.pad(w, ((0, 0), (0, N_pad - N)))
        b = jnp.pad(b, (0, N_pad - N))
    bb = b.reshape(1, N_pad).astype(jnp.float32)

    tn = _pick_tile(N_pad, (512, 256, 128))
    est = (2 * tm * tk * 2 + 2 * tk * tn * 2 + 2 * tn * 4
           + tm * tn * 4 + 2 * tm * tn * jnp.dtype(out_dtype).itemsize)
    # TODO(synk): on v5e sweep pipeline_mode=pl.Buffered(3) on the weight
    # BlockSpec (weights are the only fresh DMA per k step).
    out = pl.pallas_call(
        functools.partial(_linear_kernel, activation=activation),
        out_shape=jax.ShapeDtypeStruct((M, N_pad), out_dtype),
        grid=(M // tm, N_pad // tn, K // tk),
        in_specs=[
            pl.BlockSpec((tm, tk), lambda i, j, k: (i, k)),
            pl.BlockSpec((tk, tn), lambda i, j, k: (k, j)),
            pl.BlockSpec((1, tn), lambda i, j, k: (0, j)),
        ],
        out_specs=pl.BlockSpec((tm, tn), lambda i, j, k: (i, j)),
        scratch_shapes=[pltpu.VMEM((tm, tn), jnp.float32)],
        compiler_params=_compiler_params(
            ("parallel", "parallel", "arbitrary"), est),
    )(x, w, bb)
    if N_pad != N:
        out = out[:, :N]
    return out


# ----------------------------- attention kernel -----------------------------

def _mha_kernel(q_ref, k_ref, v_ref, pad_ref, o_ref, m_sc, l_sc, acc_sc,
                *, scale):
    """One (batch, head) pair, KV-tiled flash-style online softmax.

    q block: (S, Dh) bf16 (resident across KV tiles); k/v blocks: (tkv, Dh)
    bf16; pad block: (1, tkv) f32 additive key bias.  Causal + padding masks
    are fused into ONE additive term; scale is folded into q.
    """
    kv = pl.program_id(2)
    S, Dh = q_ref.shape
    tkv = k_ref.shape[0]

    @pl.when(kv == 0)
    def _():
        m_sc[...] = jnp.full(m_sc.shape, MASK_VALUE, jnp.float32)
        l_sc[...] = jnp.zeros_like(l_sc)
        acc_sc[...] = jnp.zeros_like(acc_sc)

    q = q_ref[...] * scale                                    # fold 1/sqrt(Dh)
    s = lax.dot_general(q, k_ref[...], (((1,), (1,)), ((), ())),
                        preferred_element_type=jnp.float32)   # (S, tkv) f32

    row = lax.broadcasted_iota(jnp.int32, (S, tkv), 0)
    col = lax.broadcasted_iota(jnp.int32, (S, tkv), 1) + kv * tkv
    s = s + jnp.where(col > row, MASK_VALUE, pad_ref[...])    # single bias add

    m_prev = m_sc[...]
    m_new = jnp.maximum(m_prev, jnp.max(s, axis=-1, keepdims=True))
    alpha = jnp.exp(m_prev - m_new)
    p = jnp.exp(s - m_new)
    l_sc[...] = alpha * l_sc[...] + jnp.sum(p, axis=-1, keepdims=True)
    acc_sc[...] = alpha * acc_sc[...] + jnp.dot(
        p.astype(v_ref.dtype), v_ref[...], preferred_element_type=jnp.float32)
    m_sc[...] = m_new

    @pl.when(kv == pl.num_programs(2) - 1)
    def _():
        o_ref[...] = (acc_sc[...]
                      * pl.reciprocal(l_sc[...], approx=True)).astype(o_ref.dtype)


def multihead_attention(q, k, v, pad_bias):
    """q,k,v: (B, H, S, Dh) bf16; pad_bias: (B, 1, S) f32 additive key bias."""
    B, H, S, Dh = q.shape
    scale = 1.0 / math.sqrt(Dh)
    # KV tiling keeps scores at O(S * tkv) instead of O(H * S^2) per step.
    tkv = S if S <= 512 else _pick_tile(S, (512, 256, 128))
    nkv = S // tkv
    # TODO(synk): for very long S also tile the query axis on the grid.
    est = (2 * S * Dh * 2 + 4 * tkv * Dh * 2 + 2 * tkv * 4      # q, k, v, pad
           + 2 * S * Dh * 2                                     # out
           + 2 * S * 4 + S * Dh * 4                             # m/l/acc scratch
           + 3 * S * tkv * 4)                                   # s/p temporaries
    return pl.pallas_call(
        functools.partial(_mha_kernel, scale=scale),
        out_shape=jax.ShapeDtypeStruct((B, H, S, Dh), jnp.bfloat16),
        grid=(B, H, nkv),
        in_specs=[
            pl.BlockSpec((None, None, S, Dh), lambda b, h, kv: (b, h, 0, 0)),
            pl.BlockSpec((None, None, tkv, Dh), lambda b, h, kv: (b, h, kv, 0)),
            pl.BlockSpec((None, None, tkv, Dh), lambda b, h, kv: (b, h, kv, 0)),
            pl.BlockSpec((None, 1, tkv), lambda b, h, kv: (b, 0, kv)),
        ],
        out_specs=pl.BlockSpec((None, None, S, Dh), lambda b, h, kv: (b, h, 0, 0)),
        scratch_shapes=[pltpu.VMEM((S, 1), jnp.float32),
                        pltpu.VMEM((S, 1), jnp.float32),
                        pltpu.VMEM((S, Dh), jnp.float32)],
        compiler_params=_compiler_params(
            ("parallel", "parallel", "arbitrary"), est),
    )(q, k, v, pad_bias)


# ----------------------------- parameters / glue -----------------------------

def positional_encoding(max_len, d_model):
    position = jnp.arange(max_len, dtype=jnp.float32)[:, None]
    div_term = jnp.exp(jnp.arange(0, d_model, 2, dtype=jnp.float32)
                       * (-math.log(10000.0) / d_model))
    pe = jnp.zeros((max_len, d_model), jnp.float32)
    pe = pe.at[:, 0::2].set(jnp.sin(position * div_term))
    pe = pe.at[:, 1::2].set(jnp.cos(position * div_term))
    # matches pe.unsqueeze(0).transpose(0, 1) -> (max_len, 1, d_model)
    return pe[:, None, :]


def init_params(key, vocab_size, d_model, dim_ff, num_layers):
    keys = jax.random.split(key, 2 + num_layers)

    def w_init(k, shape):
        # weights stored pre-transposed (in, out) and pre-cast to bf16
        return (jax.random.normal(k, shape, jnp.float32) * 0.02).astype(
            jnp.bfloat16)

    params = {
        "embedding": jax.random.normal(keys[0], (vocab_size, d_model),
                                       jnp.float32) * 0.02,
        "linear_w": w_init(keys[1], (d_model, vocab_size)),
        "linear_b": jnp.zeros((vocab_size,), jnp.float32),
        "layers": [],
    }
    for l in range(num_layers):
        k = jax.random.split(keys[2 + l], 4)
        params["layers"].append({
            "in_proj_w": w_init(k[0], (d_model, 3 * d_model)),
            "in_proj_b": jnp.zeros((3 * d_model,), jnp.float32),
            "out_proj_w": w_init(k[1], (d_model, d_model)),
            "out_proj_b": jnp.zeros((d_model,), jnp.float32),
            "ln1_g": jnp.ones((d_model,), jnp.float32),
            "ln1_b": jnp.zeros((d_model,), jnp.float32),
            "ln2_g": jnp.ones((d_model,), jnp.float32),
            "ln2_b": jnp.zeros((d_model,), jnp.float32),
            "ff1_w": w_init(k[2], (d_model, dim_ff)),
            "ff1_b": jnp.zeros((dim_ff,), jnp.float32),
            "ff2_w": w_init(k[3], (dim_ff, d_model)),
            "ff2_b": jnp.zeros((d_model,), jnp.float32),
        })
    return params


def basic_transformer_forward(params, src, src_padding_mask, *, d_model, nhead):
    B, S = src.shape
    H = nhead
    Dh = d_model // H

    # embedding lookup (gather stays in plain JAX) + sqrt(d_model) scale
    x = params["embedding"][src] * math.sqrt(d_model)          # (B, S, D) f32

    # PositionalEncoding: faithfully reproduces the PyTorch module, which with
    # batch_first inputs indexes pe by the *batch* dimension (x.size(0)).
    x = x + params["pe"][:B]                                   # (B,S,D)+(B,1,D)

    # additive key-padding bias (B,1,S): 0 keep / MASK_VALUE drop.  The causal
    # part of the mask is generated inside the attention kernel.
    pad_bias = jnp.where(src_padding_mask, MASK_VALUE,
                         0.0).astype(jnp.float32)[:, None, :]

    x_flat = x.reshape(B * S, d_model)                         # f32 residual path
    for layer in params["layers"]:
        # --- self-attention sublayer (post-norm) ---
        qkv = linear(x_flat, layer["in_proj_w"], layer["in_proj_b"],
                     out_dtype=jnp.bfloat16)                   # (B*S, 3D) bf16
        # single reshape+transpose to head-major layout (no jnp.split).
        # TODO(synk): for Dh % 128 == 0 read q/k/v straight out of the qkv
        # buffer inside the attention kernel via (B,H)-grid BlockSpec column
        # offsets and drop this XLA transpose entirely.
        qkv = qkv.reshape(B, S, 3, H, Dh).transpose(2, 0, 3, 1, 4)  # (3,B,H,S,Dh)
        attn = multihead_attention(qkv[0], qkv[1], qkv[2], pad_bias)
        attn = attn.transpose(0, 2, 1, 3).reshape(B * S, d_model)
        # fused: out-proj matmul + bias + residual add + LayerNorm (ln1)
        x_flat = linear(attn, layer["out_proj_w"], layer["out_proj_b"],
                        residual=x_flat,
                        ln_gamma=layer["ln1_g"], ln_beta=layer["ln1_b"])

        # --- feed-forward sublayer (post-norm), ReLU activation ---
        # TODO(synk): fuse ff1(+ReLU)+ff2 into one kernel tiling dim_ff as an
        # inner reduction so the hidden activation never round-trips HBM.
        h = linear(x_flat, layer["ff1_w"], layer["ff1_b"],
                   activation="relu", out_dtype=jnp.bfloat16)
        # fused: ff2 matmul + bias + residual add + LayerNorm (ln2)
        x_flat = linear(h, layer["ff2_w"], layer["ff2_b"],
                        residual=x_flat,
                        ln_gamma=layer["ln2_g"], ln_beta=layer["ln2_b"])

    logits = linear(x_flat, params["linear_w"], params["linear_b"])
    return logits.reshape(B, S, -1)


# ----------------------------- main -----------------------------

if __name__ == "__main__":
    vocab_size = 32
    d_model = 32
    nhead = 4
    dim_feedforward = 64
    num_layers = 2
    B, S = 2, 8

    key = jax.random.PRNGKey(0)
    pkey, dkey = jax.random.split(key)

    params = init_params(pkey, vocab_size, d_model, dim_feedforward, num_layers)
    params["pe"] = positional_encoding(5000, d_model)

    src = jax.random.randint(dkey, (B, S), 0, vocab_size, dtype=jnp.int32)
    # True = padded (ignored) key position; only trailing positions padded
    src_padding_mask = jnp.array(
        [[False] * S, [False] * (S - 3) + [True] * 3], dtype=bool)

    fwd = jax.jit(functools.partial(basic_transformer_forward,
                                    d_model=d_model, nhead=nhead))
    logits = fwd(params, src, src_padding_mask)
    jax.block_until_ready(logits)

    assert logits.shape == (B, S, vocab_size), logits.shape
    assert bool(jnp.all(jnp.isfinite(logits)))
    print("KERNEL_OK")
</pallas_src>

<mosaic_0001>
module attributes {stable_mosaic.version = 11 : i64} {
  func.func @_linear_kernel(%arg0: i32, %arg1: i32, %arg2: i32, %arg3: memref<16x32xbf16, #tpu.memory_space<vmem>>, %arg4: memref<32x128xbf16, #tpu.memory_space<vmem>>, %arg5: memref<1x128xf32, #tpu.memory_space<vmem>>, %arg6: memref<16x128xbf16, #tpu.memory_space<vmem>>, %arg7: memref<16x128xf32, #tpu.memory_space<vmem>>) attributes {dimension_semantics = [#tpu.dimension_semantics<parallel>, #tpu.dimension_semantics<parallel>, #tpu.dimension_semantics<arbitrary>], iteration_bounds = array<i64: 1, 1, 1>, scalar_prefetch = 0 : i64, scratch_operands = 1 : i64, tpu.core_type = #tpu.core_type<tc>, window_params = [{transform_indices = @transform_0, window_bounds = array<i64: 16, 32>}, {transform_indices = @transform_1, window_bounds = array<i64: 32, 128>}, {transform_indices = @transform_2, window_bounds = array<i64: 1, 128>}, {transform_indices = @transform_3, window_bounds = array<i64: 16, 128>}]} {
    %c0_i32 = arith.constant 0 : i32
    %0 = arith.cmpi eq, %arg2, %c0_i32 : i32
    %1 = arith.extui %0 : i1 to i32
    %c0_i32_0 = arith.constant 0 : i32
    %2 = arith.cmpi ne, %1, %c0_i32_0 : i32
    scf.if %2 {
      %cst_10 = arith.constant 0.000000e+00 : f32
      %12 = vector.broadcast %cst_10 : f32 to vector<16x128xf32>
      %c0_11 = arith.constant 0 : index
      %c0_12 = arith.constant 0 : index
      %13 = vector.load %arg7[%c0_11, %c0_12] : memref<16x128xf32, #tpu.memory_space<vmem>>, vector<16x128xf32>
      tpu.vector_store %arg7[%c0_11, %c0_12], %12 {strides = array<i32>} : memref<16x128xf32, #tpu.memory_space<vmem>>, vector<16x128xf32>,
    } else {
    }
    %c0 = arith.constant 0 : index
    %c0_1 = arith.constant 0 : index
    %3 = vector.load %arg7[%c0, %c0_1] : memref<16x128xf32, #tpu.memory_space<vmem>>, vector<16x128xf32>
    %c0_2 = arith.constant 0 : index
    %c0_3 = arith.constant 0 : index
    %4 = vector.load %arg3[%c0_2, %c0_3] : memref<16x32xbf16, #tpu.memory_space<vmem>>, vector<16x32xbf16>
    %c0_4 = arith.constant 0 : index
    %c0_5 = arith.constant 0 : index
    %5 = vector.load %arg4[%c0_4, %c0_5] : memref<32x128xbf16, #tpu.memory_space<vmem>>, vector<32x128xbf16>
    %cst = arith.constant dense<0.000000e+00> : vector<16x128xf32>
    %6 = tpu.matmul %4, %5, %cst {dimension_numbers = #tpu.dot_dimension_numbers<[1], [0], [0], [1], [0, 0, 1, 1], [], []>} : vector<16x32xbf16>, vector<32x128xbf16>, vector<16x128xf32> -> vector<16x128xf32>
    %7 = arith.addf %3, %6 : vector<16x128xf32>
    %c0_6 = arith.constant 0 : index
    %c0_7 = arith.constant 0 : index
    %8 = vector.load %arg7[%c0_6, %c0_7] : memref<16x128xf32, #tpu.memory_space<vmem>>, vector<16x128xf32>
    tpu.vector_store %arg7[%c0_6, %c0_7], %7 {strides = array<i32>} : memref<16x128xf32, #tpu.memory_space<vmem>>, vector<16x128xf32>,
    %c0_i32_8 = arith.constant 0 : i32
    %9 = arith.cmpi eq, %arg2, %c0_i32_8 : i32
    %10 = arith.extui %9 : i1 to i32
    %c0_i32_9 = arith.constant 0 : i32
    %11 = arith.cmpi ne, %10, %c0_i32_9 : i32
    scf.if %11 {
      %c0_10 = arith.constant 0 : index
      %c0_11 = arith.constant 0 : index
      %12 = vector.load %arg7[%c0_10, %c0_11] : memref<16x128xf32, #tpu.memory_space<vmem>>, vector<16x128xf32>
      %c0_12 = arith.constant 0 : index
      %c0_13 = arith.constant 0 : index
      %13 = vector.load %arg5[%c0_12, %c0_13] : memref<1x128xf32, #tpu.memory_space<vmem>>, vector<1x128xf32>
      %14 = vector.broadcast %13 : vector<1x128xf32> to vector<16x128xf32>
      %15 = arith.addf %12, %14 : vector<16x128xf32>
      %16 = arith.truncf %15 : vector<16x128xf32> to vector<16x128xbf16>
      %c0_14 = arith.constant 0 : index
      %c0_15 = arith.constant 0 : index
      %17 = vector.load %arg6[%c0_14, %c0_15] : memref<16x128xbf16, #tpu.memory_space<vmem>>, vector<16x128xbf16>
      tpu.vector_store %arg6[%c0_14, %c0_15], %16 {strides = array<i32>} : memref<16x128xbf16, #tpu.memory_space<vmem>>, vector<16x128xbf16>,
    } else {
    }
    return
  }
  func.func @transform_0(%arg0: i32, %arg1: i32, %arg2: i32) -> (i32, i32) {
    %c0_i32 = arith.constant 0 : i32
    return %arg0, %arg2 : i32, i32
  }
  func.func @transform_1(%arg0: i32, %arg1: i32, %arg2: i32) -> (i32, i32) {
    %c0_i32 = arith.constant 0 : i32
    return %arg2, %arg1 : i32, i32
  }
  func.func @transform_2(%arg0: i32, %arg1: i32, %arg2: i32) -> (i32, i32) {
    %c0_i32 = arith.constant 0 : i32
    %c0_i32_0 = arith.constant 0 : i32
    return %c0_i32, %arg1 : i32, i32
  }
  func.func @transform_3(%arg0: i32, %arg1: i32, %arg2: i32) -> (i32, i32) {
    %c0_i32 = arith.constant 0 : i32
    return %arg0, %arg1 : i32, i32
  }
}

module attributes {stable_mosaic.version = 11 : i64} {
  func.func @_mha_kernel(%arg0: i32, %arg1: i32, %arg2: i32, %arg3: memref<1x1x8x8xbf16, #tpu.memory_space<vmem>>, %arg4: memref<1x1x8x8xbf16, #tpu.memory_space<vmem>>, %arg5: memref<1x1x8x8xbf16, #tpu.memory_space<vmem>>, %arg6: memref<1x1x8xf32, #tpu.memory_space<vmem>>, %arg7: memref<1x1x8x8xbf16, #tpu.memory_space<vmem>>, %arg8: memref<8x1xf32, #tpu.memory_space<vmem>>, %arg9: memref<8x1xf32, #tpu.memory_space<vmem>>, %arg10: memref<8x8xf32, #tpu.memory_space<vmem>>) attributes {dimension_semantics = [#tpu.dimension_semantics<parallel>, #tpu.dimension_semantics<parallel>, #tpu.dimension_semantics<arbitrary>], iteration_bounds = array<i64: 2, 4, 1>, scalar_prefetch = 0 : i64, scratch_operands = 3 : i64, tpu.core_type = #tpu.core_type<tc>, window_params = [{transform_indices = @transform_0, window_bounds = array<i64: 1, 1, 8, 8>}, {transform_indices = @transform_1, window_bounds = array<i64: 1, 1, 8, 8>}, {transform_indices = @transform_2, window_bounds = array<i64: 1, 1, 8, 8>}, {transform_indices = @transform_3, window_bounds = array<i64: 1, 1, 8>}, {transform_indices = @transform_4, window_bounds = array<i64: 1, 1, 8, 8>}]} {
    %c0_i32 = arith.constant 0 : i32
    %0 = arith.cmpi eq, %arg2, %c0_i32 : i32
    %1 = arith.extui %0 : i1 to i32
    %c0_i32_0 = arith.constant 0 : i32
    %2 = arith.cmpi ne, %1, %c0_i32_0 : i32
    scf.if %2 {
      %cst_34 = arith.constant -1.000000e+30 : f32
      %51 = vector.broadcast %cst_34 : f32 to vector<8x1xf32>
      %c0_35 = arith.constant 0 : index
      %c0_36 = arith.constant 0 : index
      %52 = vector.load %arg8[%c0_35, %c0_36] : memref<8x1xf32, #tpu.memory_space<vmem>>, vector<8x1xf32>
      tpu.vector_store %arg8[%c0_35, %c0_36], %51 {strides = array<i32>} : memref<8x1xf32, #tpu.memory_space<vmem>>, vector<8x1xf32>,
      %cst_37 = arith.constant 0.000000e+00 : f32
      %53 = vector.broadcast %cst_37 : f32 to vector<8x1xf32>
      %c0_38 = arith.constant 0 : index
      %c0_39 = arith.constant 0 : index
      %54 = vector.load %arg9[%c0_38, %c0_39] : memref<8x1xf32, #tpu.memory_space<vmem>>, vector<8x1xf32>
      tpu.vector_store %arg9[%c0_38, %c0_39], %53 {strides = array<i32>} : memref<8x1xf32, #tpu.memory_space<vmem>>, vector<8x1xf32>,
      %cst_40 = arith.constant 0.000000e+00 : f32
      %55 = vector.broadcast %cst_40 : f32 to vector<8x8xf32>
      %c0_41 = arith.constant 0 : index
      %c0_42 = arith.constant 0 : index
      %56 = vector.load %arg10[%c0_41, %c0_42] : memref<8x8xf32, #tpu.memory_space<vmem>>, vector<8x8xf32>
      tpu.vector_store %arg10[%c0_41, %c0_42], %55 {strides = array<i32>} : memref<8x8xf32, #tpu.memory_space<vmem>>, vector<8x8xf32>,
    } else {
    }
    %c0 = arith.constant 0 : index
    %c0_1 = arith.constant 0 : index
    %c0_2 = arith.constant 0 : index
    %c0_3 = arith.constant 0 : index
    %3 = vector.load %arg3[%c0, %c0_1, %c0_2, %c0_3] : memref<1x1x8x8xbf16, #tpu.memory_space<vmem>>, vector<1x1x8x8xbf16>
    %4 = vector.shape_cast %3 : vector<1x1x8x8xbf16> to vector<8x8xbf16>
    %cst = arith.constant 3.535160e-01 : bf16
    %5 = vector.broadcast %cst : bf16 to vector<8x8xbf16>
    %6 = arith.mulf %4, %5 : vector<8x8xbf16>
    %c0_4 = arith.constant 0 : index
    %c0_5 = arith.constant 0 : index
    %c0_6 = arith.constant 0 : index
    %c0_7 = arith.constant 0 : index
    %7 = vector.load %arg4[%c0_4, %c0_5, %c0_6, %c0_7] : memref<1x1x8x8xbf16, #tpu.memory_space<vmem>>, vector<1x1x8x8xbf16>
    %8 = vector.shape_cast %7 : vector<1x1x8x8xbf16> to vector<8x8xbf16>
    %cst_8 = arith.constant dense<0.000000e+00> : vector<8x8xf32>
    %9 = tpu.matmul %6, %8, %cst_8 {dimension_numbers = #tpu.dot_dimension_numbers<[1], [1], [0], [0], [0, 0, 1, 0], [], []>} : vector<8x8xbf16>, vector<8x8xbf16>, vector<8x8xf32> -> vector<8x8xf32>
    %10 = tpu.iota {dimensions = array<i32: 0>} : vector<8x8xi32>
    %11 = tpu.iota {dimensions = array<i32: 1>} : vector<8x8xi32>
    %c8_i32 = arith.constant 8 : i32
    %12 = arith.muli %arg2, %c8_i32 : i32
    %13 = vector.broadcast %12 : i32 to vector<8x8xi32>
    %14 = arith.addi %11, %13 : vector<8x8xi32>
    %15 = arith.cmpi sgt, %14, %10 : vector<8x8xi32>
    %c0_9 = arith.constant 0 : index
    %c0_10 = arith.constant 0 : index
    %c0_11 = arith.constant 0 : index
    %16 = vector.load %arg6[%c0_9, %c0_10, %c0_11] : memref<1x1x8xf32, #tpu.memory_space<vmem>>, vector<1x1x8xf32>
    %17 = vector.shape_cast %16 : vector<1x1x8xf32> to vector<1x8xf32>
    %cst_12 = arith.constant -1.000000e+30 : f32
    %18 = vector.broadcast %cst_12 : f32 to vector<8x8xf32>
    %19 = vector.shape_cast %17 : vector<1x8xf32> to vector<1x8xf32>
    %20 = vector.broadcast %19 : vector<1x8xf32> to vector<8x8xf32>
    %21 = arith.select %15, %18, %20 : vector<8x8xi1>, vector<8x8xf32>
    %22 = arith.addf %9, %21 : vector<8x8xf32>
    %c0_13 = arith.constant 0 : index
    %c0_14 = arith.constant 0 : index
    %23 = vector.load %arg8[%c0_13, %c0_14] : memref<8x1xf32, #tpu.memory_space<vmem>>, vector<8x1xf32>
    %cst_15 = arith.constant dense<0xFF800000> : vector<8xf32>
    %24 = vector.multi_reduction <maximumf>, %22, %cst_15 [1] : vector<8x8xf32> to vector<8xf32>
    %25 = vector.shape_cast %24 : vector<8xf32> to vector<8x1xf32>
    %26 = arith.maximumf %23, %25 : vector<8x1xf32>
    %27 = arith.subf %23, %26 : vector<8x1xf32>
    %28 = math.exp %27 : vector<8x1xf32>
    %29 = vector.broadcast %26 : vector<8x1xf32> to vector<8x8xf32>
    %30 = arith.subf %22, %29 : vector<8x8xf32>
    %31 = math.exp %30 : vector<8x8xf32>
    %c0_16 = arith.constant 0 : index
    %c0_17 = arith.constant 0 : index
    %32 = vector.load %arg9[%c0_16, %c0_17] : memref<8x1xf32, #tpu.memory_space<vmem>>, vector<8x1xf32>
    %33 = arith.mulf %28, %32 : vector<8x1xf32>
    %cst_18 = arith.constant dense<0.000000e+00> : vector<8xf32>
    %34 = vector.multi_reduction <add>, %31, %cst_18 [1] : vector<8x8xf32> to vector<8xf32>
    %35 = vector.shape_cast %34 : vector<8xf32> to vector<8x1xf32>
    %36 = arith.addf %33, %35 : vector<8x1xf32>
    %c0_19 = arith.constant 0 : index
    %c0_20 = arith.constant 0 : index
    %37 = vector.load %arg9[%c0_19, %c0_20] : memref<8x1xf32, #tpu.memory_space<vmem>>, vector<8x1xf32>
    tpu.vector_store %arg9[%c0_19, %c0_20], %36 {strides = array<i32>} : memref<8x1xf32, #tpu.memory_space<vmem>>, vector<8x1xf32>,
    %c0_21 = arith.constant 0 : index
    %c0_22 = arith.constant 0 : index
    %38 = vector.load %arg10[%c0_21, %c0_22] : memref<8x8xf32, #tpu.memory_space<vmem>>, vector<8x8xf32>
    %39 = vector.broadcast %28 : vector<8x1xf32> to vector<8x8xf32>
    %40 = arith.mulf %39, %38 : vector<8x8xf32>
    %41 = arith.truncf %31 : vector<8x8xf32> to vector<8x8xbf16>
    %c0_23 = arith.constant 0 : index
    %c0_24 = arith.constant 0 : index
    %c0_25 = arith.constant 0 : index
    %c0_26 = arith.constant 0 : index
    %42 = vector.load %arg5[%c0_23, %c0_24, %c0_25, %c0_26] : memref<1x1x8x8xbf16, #tpu.memory_space<vmem>>, vector<1x1x8x8xbf16>
    %43 = vector.shape_cast %42 : vector<1x1x8x8xbf16> to vector<8x8xbf16>
    %cst_27 = arith.constant dense<0.000000e+00> : vector<8x8xf32>
    %44 = tpu.matmul %41, %43, %cst_27 {dimension_numbers = #tpu.dot_dimension_numbers<[1], [0], [0], [1], [0, 0, 1, 1], [], []>} : vector<8x8xbf16>, vector<8x8xbf16>, vector<8x8xf32> -> vector<8x8xf32>
    %45 = arith.addf %40, %44 : vector<8x8xf32>
    %c0_28 = arith.constant 0 : index
    %c0_29 = arith.constant 0 : index
    %46 = vector.load %arg10[%c0_28, %c0_29] : memref<8x8xf32, #tpu.memory_space<vmem>>, vector<8x8xf32>
    tpu.vector_store %arg10[%c0_28, %c0_29], %45 {strides = array<i32>} : memref<8x8xf32, #tpu.memory_space<vmem>>, vector<8x8xf32>,
    %c0_30 = arith.constant 0 : index
    %c0_31 = arith.constant 0 : index
    %47 = vector.load %arg8[%c0_30, %c0_31] : memref<8x1xf32, #tpu.memory_space<vmem>>, vector<8x1xf32>
    tpu.vector_store %arg8[%c0_30, %c0_31], %26 {strides = array<i32>} : memref<8x1xf32, #tpu.memory_space<vmem>>, vector<8x1xf32>,
    %c0_i32_32 = arith.constant 0 : i32
    %48 = arith.cmpi eq, %arg2, %c0_i32_32 : i32
    %49 = arith.extui %48 : i1 to i32
    %c0_i32_33 = arith.constant 0 : i32
    %50 = arith.cmpi ne, %49, %c0_i32_33 : i32
    scf.if %50 {
      %c0_34 = arith.constant 0 : index
      %c0_35 = arith.constant 0 : index
      %51 = vector.load %arg10[%c0_34, %c0_35] : memref<8x8xf32, #tpu.memory_space<vmem>>, vector<8x8xf32>
      %c0_36 = arith.constant 0 : index
      %c0_37 = arith.constant 0 : index
      %52 = vector.load %arg9[%c0_36, %c0_37] : memref<8x1xf32, #tpu.memory_space<vmem>>, vector<8x1xf32>
      %53 = tpu.reciprocal %52 {approx = true} : vector<8x1xf32> -> vector<8x1xf32>
      %54 = vector.broadcast %53 : vector<8x1xf32> to vector<8x8xf32>
      %55 = arith.mulf %51, %54 : vector<8x8xf32>
      %56 = arith.truncf %55 : vector<8x8xf32> to vector<8x8xbf16>
      %c0_38 = arith.constant 0 : index
      %c0_39 = arith.constant 0 : index
      %c0_40 = arith.constant 0 : index
      %c0_41 = arith.constant 0 : index
      %57 = vector.load %arg7[%c0_38, %c0_39, %c0_40, %c0_41] : memref<1x1x8x8xbf16, #tpu.memory_space<vmem>>, vector<1x1x8x8xbf16>
      %58 = vector.shape_cast %57 : vector<1x1x8x8xbf16> to vector<8x8xbf16>
      %59 = vector.shape_cast %56 : vector<8x8xbf16> to vector<1x1x8x8xbf16>
      tpu.vector_store %arg7[%c0_38, %c0_39, %c0_40, %c0_41], %59 {strides = array<i32>} : memref<1x1x8x8xbf16, #tpu.memory_space<vmem>>, vector<1x1x8x8xbf16>,
    } else {
    }
    return
  }
  func.func @transform_0(%arg0: i32, %arg1: i32, %arg2: i32) -> (i32, i32, i32, i32) {
    %c0_i32 = arith.constant 0 : i32
    %c0_i32_0 = arith.constant 0 : i32
    %c0_i32_1 = arith.constant 0 : i32
    return %arg0, %arg1, %c0_i32, %c0_i32_0 : i32, i32, i32, i32
  }
  func.func @transform_1(%arg0: i32, %arg1: i32, %arg2: i32) -> (i32, i32, i32, i32) {
    %c0_i32 = arith.constant 0 : i32
    %c0_i32_0 = arith.constant 0 : i32
    return %arg0, %arg1, %arg2, %c0_i32 : i32, i32, i32, i32
  }
  func.func @transform_2(%arg0: i32, %arg1: i32, %arg2: i32) -> (i32, i32, i32, i32) {
    %c0_i32 = arith.constant 0 : i32
    %c0_i32_0 = arith.constant 0 : i32
    return %arg0, %arg1, %arg2, %c0_i32 : i32, i32, i32, i32
  }
  func.func @transform_3(%arg0: i32, %arg1: i32, %arg2: i32) -> (i32, i32, i32) {
    %c0_i32 = arith.constant 0 : i32
    %c0_i32_0 = arith.constant 0 : i32
    return %arg0, %c0_i32, %arg2 : i32, i32, i32
  }
  func.func @transform_4(%arg0: i32, %arg1: i32, %arg2: i32) -> (i32, i32, i32, i32) {
    %c0_i32 = arith.constant 0 : i32
    %c0_i32_0 = arith.constant 0 : i32
    %c0_i32_1 = arith.constant 0 : i32
    return %arg0, %arg1, %c0_i32, %c0_i32_0 : i32, i32, i32, i32
  }
}

module attributes {stable_mosaic.version = 11 : i64} {
  func.func @_linear_res_ln_kernel(%arg0: i32, %arg1: i32, %arg2: memref<16x32xbf16, #tpu.memory_space<vmem>>, %arg3: memref<32x32xbf16, #tpu.memory_space<vmem>>, %arg4: memref<1x32xf32, #tpu.memory_space<vmem>>, %arg5: memref<16x32xf32, #tpu.memory_space<vmem>>, %arg6: memref<1x32xf32, #tpu.memory_space<vmem>>, %arg7: memref<1x32xf32, #tpu.memory_space<vmem>>, %arg8: memref<16x32xf32, #tpu.memory_space<vmem>>, %arg9: memref<16x32xf32, #tpu.memory_space<vmem>>) attributes {dimension_semantics = [#tpu.dimension_semantics<parallel>, #tpu.dimension_semantics<arbitrary>], iteration_bounds = array<i64: 1, 1>, scalar_prefetch = 0 : i64, scratch_operands = 1 : i64, tpu.core_type = #tpu.core_type<tc>, window_params = [{transform_indices = @transform_0, window_bounds = array<i64: 16, 32>}, {transform_indices = @transform_1, window_bounds = array<i64: 32, 32>}, {pipeline_mode = #tpu.pipeline_mode<synchronous>, transform_indices = @transform_2, window_bounds = array<i64: 1, 32>}, {transform_indices = @transform_3, window_bounds = array<i64: 16, 32>}, {pipeline_mode = #tpu.pipeline_mode<synchronous>, transform_indices = @transform_4, window_bounds = array<i64: 1, 32>}, {pipeline_mode = #tpu.pipeline_mode<synchronous>, transform_indices = @transform_5, window_bounds = array<i64: 1, 32>}, {transform_indices = @transform_6, window_bounds = array<i64: 16, 32>}]} {
    %c0_i32 = arith.constant 0 : i32
    %0 = arith.cmpi eq, %arg1, %c0_i32 : i32
    %1 = arith.extui %0 : i1 to i32
    %c0_i32_0 = arith.constant 0 : i32
    %2 = arith.cmpi ne, %1, %c0_i32_0 : i32
    scf.if %2 {
      %cst_10 = arith.constant 0.000000e+00 : f32
      %12 = vector.broadcast %cst_10 : f32 to vector<16x32xf32>
      %c0_11 = arith.constant 0 : index
      %c0_12 = arith.constant 0 : index
      %13 = vector.load %arg9[%c0_11, %c0_12] : memref<16x32xf32, #tpu.memory_space<vmem>>, vector<16x32xf32>
      tpu.vector_store %arg9[%c0_11, %c0_12], %12 {strides = array<i32>} : memref<16x32xf32, #tpu.memory_space<vmem>>, vector<16x32xf32>,
    } else {
    }
    %c0 = arith.constant 0 : index
    %c0_1 = arith.constant 0 : index
    %3 = vector.load %arg9[%c0, %c0_1] : memref<16x32xf32, #tpu.memory_space<vmem>>, vector<16x32xf32>
    %c0_2 = arith.constant 0 : index
    %c0_3 = arith.constant 0 : index
    %4 = vector.load %arg2[%c0_2, %c0_3] : memref<16x32xbf16, #tpu.memory_space<vmem>>, vector<16x32xbf16>
    %c0_4 = arith.constant 0 : index
    %c0_5 = arith.constant 0 : index
    %5 = vector.load %arg3[%c0_4, %c0_5] : memref<32x32xbf16, #tpu.memory_space<vmem>>, vector<32x32xbf16>
    %cst = arith.constant dense<0.000000e+00> : vector<16x32xf32>
    %6 = tpu.matmul %4, %5, %cst {dimension_numbers = #tpu.dot_dimension_numbers<[1], [0], [0], [1], [0, 0, 1, 1], [], []>} : vector<16x32xbf16>, vector<32x32xbf16>, vector<16x32xf32> -> vector<16x32xf32>
    %7 = arith.addf %3, %6 : vector<16x32xf32>
    %c0_6 = arith.constant 0 : index
    %c0_7 = arith.constant 0 : index
    %8 = vector.load %arg9[%c0_6, %c0_7] : memref<16x32xf32, #tpu.memory_space<vmem>>, vector<16x32xf32>
    tpu.vector_store %arg9[%c0_6, %c0_7], %7 {strides = array<i32>} : memref<16x32xf32, #tpu.memory_space<vmem>>, vector<16x32xf32>,
    %c0_i32_8 = arith.constant 0 : i32
    %9 = arith.cmpi eq, %arg1, %c0_i32_8 : i32
    %10 = arith.extui %9 : i1 to i32
    %c0_i32_9 = arith.constant 0 : i32
    %11 = arith.cmpi ne, %10, %c0_i32_9 : i32
    scf.if %11 {
      %c0_10 = arith.constant 0 : index
      %c0_11 = arith.constant 0 : index
      %12 = vector.load %arg9[%c0_10, %c0_11] : memref<16x32xf32, #tpu.memory_space<vmem>>, vector<16x32xf32>
      %c0_12 = arith.constant 0 : index
      %c0_13 = arith.constant 0 : index
      %13 = vector.load %arg4[%c0_12, %c0_13] : memref<1x32xf32, #tpu.memory_space<vmem>>, vector<1x32xf32>
      %14 = vector.broadcast %13 : vector<1x32xf32> to vector<16x32xf32>
      %15 = arith.addf %12, %14 : vector<16x32xf32>
      %c0_14 = arith.constant 0 : index
      %c0_15 = arith.constant 0 : index
      %16 = vector.load %arg5[%c0_14, %c0_15] : memref<16x32xf32, #tpu.memory_space<vmem>>, vector<16x32xf32>
      %17 = arith.addf %15, %16 : vector<16x32xf32>
      %cst_16 = arith.constant dense<0.000000e+00> : vector<16xf32>
      %18 = vector.multi_reduction <add>, %17, %cst_16 [1] : vector<16x32xf32> to vector<16xf32>
      %19 = vector.shape_cast %18 : vector<16xf32> to vector<16x1xf32>
      %cst_17 = arith.constant 3.125000e-02 : f32
      %20 = vector.broadcast %cst_17 : f32 to vector<16x1xf32>
      %21 = arith.mulf %19, %20 : vector<16x1xf32>
      %22 = vector.broadcast %21 : vector<16x1xf32> to vector<16x32xf32>
      %23 = arith.subf %17, %22 : vector<16x32xf32>
      %24 = arith.mulf %23, %23 : vector<16x32xf32>
      %cst_18 = arith.constant dense<0.000000e+00> : vector<16xf32>
      %25 = vector.multi_reduction <add>, %24, %cst_18 [1] : vector<16x32xf32> to vector<16xf32>
      %26 = vector.shape_cast %25 : vector<16xf32> to vector<16x1xf32>
      %cst_19 = arith.constant 3.125000e-02 : f32
      %27 = vector.broadcast %cst_19 : f32 to vector<16x1xf32>
      %28 = arith.mulf %26, %27 : vector<16x1xf32>
      %cst_20 = arith.constant 9.99999974E-6 : f32
      %29 = vector.broadcast %cst_20 : f32 to vector<16x1xf32>
      %30 = arith.addf %28, %29 : vector<16x1xf32>
      %31 = math.rsqrt %30 : vector<16x1xf32>
      %32 = vector.broadcast %31 : vector<16x1xf32> to vector<16x32xf32>
      %33 = arith.mulf %23, %32 : vector<16x32xf32>
      %c0_21 = arith.constant 0 : index
      %c0_22 = arith.constant 0 : index
      %34 = vector.load %arg6[%c0_21, %c0_22] : memref<1x32xf32, #tpu.memory_space<vmem>>, vector<1x32xf32>
      %35 = vector.broadcast %34 : vector<1x32xf32> to vector<16x32xf32>
      %36 = arith.mulf %33, %35 : vector<16x32xf32>
      %c0_23 = arith.constant 0 : index
      %c0_24 = arith.constant 0 : index
      %37 = vector.load %arg7[%c0_23, %c0_24] : memref<1x32xf32, #tpu.memory_space<vmem>>, vector<1x32xf32>
      %38 = vector.broadcast %37 : vector<1x32xf32> to vector<16x32xf32>
      %39 = arith.addf %36, %38 : vector<16x32xf32>
      %c0_25 = arith.constant 0 : index
      %c0_26 = arith.constant 0 : index
      %40 = vector.load %arg8[%c0_25, %c0_26] : memref<16x32xf32, #tpu.memory_space<vmem>>, vector<16x32xf32>
      tpu.vector_store %arg8[%c0_25, %c0_26], %39 {strides = array<i32>} : memref<16x32xf32, #tpu.memory_space<vmem>>, vector<16x32xf32>,
    } else {
    }
    return
  }
  func.func @transform_0(%arg0: i32, %arg1: i32) -> (i32, i32) {
    %c0_i32 = arith.constant 0 : i32
    return %arg0, %arg1 : i32, i32
  }
  func.func @transform_1(%arg0: i32, %arg1: i32) -> (i32, i32) {
    %c0_i32 = arith.constant 0 : i32
    %c0_i32_0 = arith.constant 0 : i32
    return %arg1, %c0_i32 : i32, i32
  }
  func.func @transform_2(%arg0: i32, %arg1: i32) -> (i32, i32) {
    %c0_i32 = arith.constant 0 : i32
    %c0_i32_0 = arith.constant 0 : i32
    %c0_i32_1 = arith.constant 0 : i32
    return %c0_i32, %c0_i32_0 : i32, i32
  }
  func.func @transform_3(%arg0: i32, %arg1: i32) -> (i32, i32) {
    %c0_i32 = arith.constant 0 : i32
    %c0_i32_0 = arith.constant 0 : i32
    return %arg0, %c0_i32 : i32, i32
  }
  func.func @transform_4(%arg0: i32, %arg1: i32) -> (i32, i32) {
    %c0_i32 = arith.constant 0 : i32
    %c0_i32_0 = arith.constant 0 : i32
    %c0_i32_1 = arith.constant 0 : i32
    return %c0_i32, %c0_i32_0 : i32, i32
  }
  func.func @transform_5(%arg0: i32, %arg1: i32) -> (i32, i32) {
    %c0_i32 = arith.constant 0 : i32
    %c0_i32_0 = arith.constant 0 : i32
    %c0_i32_1 = arith.constant 0 : i32
    return %c0_i32, %c0_i32_0 : i32, i32
  }
  func.func @transform_6(%arg0: i32, %arg1: i32) -> (i32, i32) {
    %c0_i32 = arith.constant 0 : i32
    %c0_i32_0 = arith.constant 0 : i32
    return %arg0, %c0_i32 : i32, i32
  }
}

module attributes {stable_mosaic.version = 11 : i64} {
  func.func @_linear_kernel(%arg0: i32, %arg1: i32, %arg2: i32, %arg3: memref<16x32xbf16, #tpu.memory_space<vmem>>, %arg4: memref<32x128xbf16, #tpu.memory_space<vmem>>, %arg5: memref<1x128xf32, #tpu.memory_space<vmem>>, %arg6: memref<16x128xbf16, #tpu.memory_space<vmem>>, %arg7: memref<16x128xf32, #tpu.memory_space<vmem>>) attributes {dimension_semantics = [#tpu.dimension_semantics<parallel>, #tpu.dimension_semantics<parallel>, #tpu.dimension_semantics<arbitrary>], iteration_bounds = array<i64: 1, 1, 1>, scalar_prefetch = 0 : i64, scratch_operands = 1 : i64, tpu.core_type = #tpu.core_type<tc>, window_params = [{transform_indices = @transform_0, window_bounds = array<i64: 16, 32>}, {transform_indices = @transform_1, window_bounds = array<i64: 32, 128>}, {transform_indices = @transform_2, window_bounds = array<i64: 1, 128>}, {transform_indices = @transform_3, window_bounds = array<i64: 16, 128>}]} {
    %c0_i32 = arith.constant 0 : i32
    %0 = arith.cmpi eq, %arg2, %c0_i32 : i32
    %1 = arith.extui %0 : i1 to i32
    %c0_i32_0 = arith.constant 0 : i32
    %2 = arith.cmpi ne, %1, %c0_i32_0 : i32
    scf.if %2 {
      %cst_10 = arith.constant 0.000000e+00 : f32
      %12 = vector.broadcast %cst_10 : f32 to vector<16x128xf32>
      %c0_11 = arith.constant 0 : index
      %c0_12 = arith.constant 0 : index
      %13 = vector.load %arg7[%c0_11, %c0_12] : memref<16x128xf32, #tpu.memory_space<vmem>>, vector<16x128xf32>
      tpu.vector_store %arg7[%c0_11, %c0_12], %12 {strides = array<i32>} : memref<16x128xf32, #tpu.memory_space<vmem>>, vector<16x128xf32>,
    } else {
    }
    %c0 = arith.constant 0 : index
    %c0_1 = arith.constant 0 : index
    %3 = vector.load %arg7[%c0, %c0_1] : memref<16x128xf32, #tpu.memory_space<vmem>>, vector<16x128xf32>
    %c0_2 = arith.constant 0 : index
    %c0_3 = arith.constant 0 : index
    %4 = vector.load %arg3[%c0_2, %c0_3] : memref<16x32xbf16, #tpu.memory_space<vmem>>, vector<16x32xbf16>
    %c0_4 = arith.constant 0 : index
    %c0_5 = arith.constant 0 : index
    %5 = vector.load %arg4[%c0_4, %c0_5] : memref<32x128xbf16, #tpu.memory_space<vmem>>, vector<32x128xbf16>
    %cst = arith.constant dense<0.000000e+00> : vector<16x128xf32>
    %6 = tpu.matmul %4, %5, %cst {dimension_numbers = #tpu.dot_dimension_numbers<[1], [0], [0], [1], [0, 0, 1, 1], [], []>} : vector<16x32xbf16>, vector<32x128xbf16>, vector<16x128xf32> -> vector<16x128xf32>
    %7 = arith.addf %3, %6 : vector<16x128xf32>
    %c0_6 = arith.constant 0 : index
    %c0_7 = arith.constant 0 : index
    %8 = vector.load %arg7[%c0_6, %c0_7] : memref<16x128xf32, #tpu.memory_space<vmem>>, vector<16x128xf32>
    tpu.vector_store %arg7[%c0_6, %c0_7], %7 {strides = array<i32>} : memref<16x128xf32, #tpu.memory_space<vmem>>, vector<16x128xf32>,
    %c0_i32_8 = arith.constant 0 : i32
    %9 = arith.cmpi eq, %arg2, %c0_i32_8 : i32
    %10 = arith.extui %9 : i1 to i32
    %c0_i32_9 = arith.constant 0 : i32
    %11 = arith.cmpi ne, %10, %c0_i32_9 : i32
    scf.if %11 {
      %c0_10 = arith.constant 0 : index
      %c0_11 = arith.constant 0 : index
      %12 = vector.load %arg7[%c0_10, %c0_11] : memref<16x128xf32, #tpu.memory_space<vmem>>, vector<16x128xf32>
      %c0_12 = arith.constant 0 : index
      %c0_13 = arith.constant 0 : index
      %13 = vector.load %arg5[%c0_12, %c0_13] : memref<1x128xf32, #tpu.memory_space<vmem>>, vector<1x128xf32>
      %14 = vector.broadcast %13 : vector<1x128xf32> to vector<16x128xf32>
      %15 = arith.addf %12, %14 : vector<16x128xf32>
      %cst_14 = arith.constant 0.000000e+00 : f32
      %16 = vector.broadcast %cst_14 : f32 to vector<16x128xf32>
      %17 = arith.maximumf %15, %16 : vector<16x128xf32>
      %18 = arith.truncf %17 : vector<16x128xf32> to vector<16x128xbf16>
      %c0_15 = arith.constant 0 : index
      %c0_16 = arith.constant 0 : index
      %19 = vector.load %arg6[%c0_15, %c0_16] : memref<16x128xbf16, #tpu.memory_space<vmem>>, vector<16x128xbf16>
      tpu.vector_store %arg6[%c0_15, %c0_16], %18 {strides = array<i32>} : memref<16x128xbf16, #tpu.memory_space<vmem>>, vector<16x128xbf16>,
    } else {
    }
    return
  }
  func.func @transform_0(%arg0: i32, %arg1: i32, %arg2: i32) -> (i32, i32) {
    %c0_i32 = arith.constant 0 : i32
    return %arg0, %arg2 : i32, i32
  }
  func.func @transform_1(%arg0: i32, %arg1: i32, %arg2: i32) -> (i32, i32) {
    %c0_i32 = arith.constant 0 : i32
    return %arg2, %arg1 : i32, i32
  }
  func.func @transform_2(%arg0: i32, %arg1: i32, %arg2: i32) -> (i32, i32) {
    %c0_i32 = arith.constant 0 : i32
    %c0_i32_0 = arith.constant 0 : i32
    return %c0_i32, %arg1 : i32, i32
  }
  func.func @transform_3(%arg0: i32, %arg1: i32, %arg2: i32) -> (i32, i32) {
    %c0_i32 = arith.constant 0 : i32
    return %arg0, %arg1 : i32, i32
  }
}

module attributes {stable_mosaic.version = 11 : i64} {
  func.func @_linear_res_ln_kernel(%arg0: i32, %arg1: i32, %arg2: memref<16x64xbf16, #tpu.memory_space<vmem>>, %arg3: memref<64x32xbf16, #tpu.memory_space<vmem>>, %arg4: memref<1x32xf32, #tpu.memory_space<vmem>>, %arg5: memref<16x32xf32, #tpu.memory_space<vmem>>, %arg6: memref<1x32xf32, #tpu.memory_space<vmem>>, %arg7: memref<1x32xf32, #tpu.memory_space<vmem>>, %arg8: memref<16x32xf32, #tpu.memory_space<vmem>>, %arg9: memref<16x32xf32, #tpu.memory_space<vmem>>) attributes {dimension_semantics = [#tpu.dimension_semantics<parallel>, #tpu.dimension_semantics<arbitrary>], iteration_bounds = array<i64: 1, 1>, scalar_prefetch = 0 : i64, scratch_operands = 1 : i64, tpu.core_type = #tpu.core_type<tc>, window_params = [{transform_indices = @transform_0, window_bounds = array<i64: 16, 64>}, {transform_indices = @transform_1, window_bounds = array<i64: 64, 32>}, {pipeline_mode = #tpu.pipeline_mode<synchronous>, transform_indices = @transform_2, window_bounds = array<i64: 1, 32>}, {transform_indices = @transform_3, window_bounds = array<i64: 16, 32>}, {pipeline_mode = #tpu.pipeline_mode<synchronous>, transform_indices = @transform_4, window_bounds = array<i64: 1, 32>}, {pipeline_mode = #tpu.pipeline_mode<synchronous>, transform_indices = @transform_5, window_bounds = array<i64: 1, 32>}, {transform_indices = @transform_6, window_bounds = array<i64: 16, 32>}]} {
    %c0_i32 = arith.constant 0 : i32
    %0 = arith.cmpi eq, %arg1, %c0_i32 : i32
    %1 = arith.extui %0 : i1 to i32
    %c0_i32_0 = arith.constant 0 : i32
    %2 = arith.cmpi ne, %1, %c0_i32_0 : i32
    scf.if %2 {
      %cst_10 = arith.constant 0.000000e+00 : f32
      %12 = vector.broadcast %cst_10 : f32 to vector<16x32xf32>
      %c0_11 = arith.constant 0 : index
      %c0_12 = arith.constant 0 : index
      %13 = vector.load %arg9[%c0_11, %c0_12] : memref<16x32xf32, #tpu.memory_space<vmem>>, vector<16x32xf32>
      tpu.vector_store %arg9[%c0_11, %c0_12], %12 {strides = array<i32>} : memref<16x32xf32, #tpu.memory_space<vmem>>, vector<16x32xf32>,
    } else {
    }
    %c0 = arith.constant 0 : index
    %c0_1 = arith.constant 0 : index
    %3 = vector.load %arg9[%c0, %c0_1] : memref<16x32xf32, #tpu.memory_space<vmem>>, vector<16x32xf32>
    %c0_2 = arith.constant 0 : index
    %c0_3 = arith.constant 0 : index
    %4 = vector.load %arg2[%c0_2, %c0_3] : memref<16x64xbf16, #tpu.memory_space<vmem>>, vector<16x64xbf16>
    %c0_4 = arith.constant 0 : index
    %c0_5 = arith.constant 0 : index
    %5 = vector.load %arg3[%c0_4, %c0_5] : memref<64x32xbf16, #tpu.memory_space<vmem>>, vector<64x32xbf16>
    %cst = arith.constant dense<0.000000e+00> : vector<16x32xf32>
    %6 = tpu.matmul %4, %5, %cst {dimension_numbers = #tpu.dot_dimension_numbers<[1], [0], [0], [1], [0, 0, 1, 1], [], []>} : vector<16x64xbf16>, vector<64x32xbf16>, vector<16x32xf32> -> vector<16x32xf32>
    %7 = arith.addf %3, %6 : vector<16x32xf32>
    %c0_6 = arith.constant 0 : index
    %c0_7 = arith.constant 0 : index
    %8 = vector.load %arg9[%c0_6, %c0_7] : memref<16x32xf32, #tpu.memory_space<vmem>>, vector<16x32xf32>
    tpu.vector_store %arg9[%c0_6, %c0_7], %7 {strides = array<i32>} : memref<16x32xf32, #tpu.memory_space<vmem>>, vector<16x32xf32>,
    %c0_i32_8 = arith.constant 0 : i32
    %9 = arith.cmpi eq, %arg1, %c0_i32_8 : i32
    %10 = arith.extui %9 : i1 to i32
    %c0_i32_9 = arith.constant 0 : i32
    %11 = arith.cmpi ne, %10, %c0_i32_9 : i32
    scf.if %11 {
      %c0_10 = arith.constant 0 : index
      %c0_11 = arith.constant 0 : index
      %12 = vector.load %arg9[%c0_10, %c0_11] : memref<16x32xf32, #tpu.memory_space<vmem>>, vector<16x32xf32>
      %c0_12 = arith.constant 0 : index
      %c0_13 = arith.constant 0 : index
      %13 = vector.load %arg4[%c0_12, %c0_13] : memref<1x32xf32, #tpu.memory_space<vmem>>, vector<1x32xf32>
      %14 = vector.broadcast %13 : vector<1x32xf32> to vector<16x32xf32>
      %15 = arith.addf %12, %14 : vector<16x32xf32>
      %c0_14 = arith.constant 0 : index
      %c0_15 = arith.constant 0 : index
      %16 = vector.load %arg5[%c0_14, %c0_15] : memref<16x32xf32, #tpu.memory_space<vmem>>, vector<16x32xf32>
      %17 = arith.addf %15, %16 : vector<16x32xf32>
      %cst_16 = arith.constant dense<0.000000e+00> : vector<16xf32>
      %18 = vector.multi_reduction <add>, %17, %cst_16 [1] : vector<16x32xf32> to vector<16xf32>
      %19 = vector.shape_cast %18 : vector<16xf32> to vector<16x1xf32>
      %cst_17 = arith.constant 3.125000e-02 : f32
      %20 = vector.broadcast %cst_17 : f32 to vector<16x1xf32>
      %21 = arith.mulf %19, %20 : vector<16x1xf32>
      %22 = vector.broadcast %21 : vector<16x1xf32> to vector<16x32xf32>
      %23 = arith.subf %17, %22 : vector<16x32xf32>
      %24 = arith.mulf %23, %23 : vector<16x32xf32>
      %cst_18 = arith.constant dense<0.000000e+00> : vector<16xf32>
      %25 = vector.multi_reduction <add>, %24, %cst_18 [1] : vector<16x32xf32> to vector<16xf32>
      %26 = vector.shape_cast %25 : vector<16xf32> to vector<16x1xf32>
      %cst_19 = arith.constant 3.125000e-02 : f32
      %27 = vector.broadcast %cst_19 : f32 to vector<16x1xf32>
      %28 = arith.mulf %26, %27 : vector<16x1xf32>
      %cst_20 = arith.constant 9.99999974E-6 : f32
      %29 = vector.broadcast %cst_20 : f32 to vector<16x1xf32>
      %30 = arith.addf %28, %29 : vector<16x1xf32>
      %31 = math.rsqrt %30 : vector<16x1xf32>
      %32 = vector.broadcast %31 : vector<16x1xf32> to vector<16x32xf32>
      %33 = arith.mulf %23, %32 : vector<16x32xf32>
      %c0_21 = arith.constant 0 : index
      %c0_22 = arith.constant 0 : index
      %34 = vector.load %arg6[%c0_21, %c0_22] : memref<1x32xf32, #tpu.memory_space<vmem>>, vector<1x32xf32>
      %35 = vector.broadcast %34 : vector<1x32xf32> to vector<16x32xf32>
      %36 = arith.mulf %33, %35 : vector<16x32xf32>
      %c0_23 = arith.constant 0 : index
      %c0_24 = arith.constant 0 : index
      %37 = vector.load %arg7[%c0_23, %c0_24] : memref<1x32xf32, #tpu.memory_space<vmem>>, vector<1x32xf32>
      %38 = vector.broadcast %37 : vector<1x32xf32> to vector<16x32xf32>
      %39 = arith.addf %36, %38 : vector<16x32xf32>
      %c0_25 = arith.constant 0 : index
      %c0_26 = arith.constant 0 : index
      %40 = vector.load %arg8[%c0_25, %c0_26] : memref<16x32xf32, #tpu.memory_space<vmem>>, vector<16x32xf32>
      tpu.vector_store %arg8[%c0_25, %c0_26], %39 {strides = array<i32>} : memref<16x32xf32, #tpu.memory_space<vmem>>, vector<16x32xf32>,
    } else {
    }
    return
  }
  func.func @transform_0(%arg0: i32, %arg1: i32) -> (i32, i32) {
    %c0_i32 = arith.constant 0 : i32
    return %arg0, %arg1 : i32, i32
  }
  func.func @transform_1(%arg0: i32, %arg1: i32) -> (i32, i32) {
    %c0_i32 = arith.constant 0 : i32
    %c0_i32_0 = arith.constant 0 : i32
    return %arg1, %c0_i32 : i32, i32
  }
  func.func @transform_2(%arg0: i32, %arg1: i32) -> (i32, i32) {
    %c0_i32 = arith.constant 0 : i32
    %c0_i32_0 = arith.constant 0 : i32
    %c0_i32_1 = arith.constant 0 : i32
    return %c0_i32, %c0_i32_0 : i32, i32
  }
  func.func @transform_3(%arg0: i32, %arg1: i32) -> (i32, i32) {
    %c0_i32 = arith.constant 0 : i32
    %c0_i32_0 = arith.constant 0 : i32
    return %arg0, %c0_i32 : i32, i32
  }
  func.func @transform_4(%arg0: i32, %arg1: i32) -> (i32, i32) {
    %c0_i32 = arith.constant 0 : i32
    %c0_i32_0 = arith.constant 0 : i32
    %c0_i32_1 = arith.constant 0 : i32
    return %c0_i32, %c0_i32_0 : i32, i32
  }
  func.func @transform_5(%arg0: i32, %arg1: i32) -> (i32, i32) {
    %c0_i32 = arith.constant 0 : i32
    %c0_i32_0 = arith.constant 0 : i32
    %c0_i32_1 = arith.constant 0 : i32
    return %c0_i32, %c0_i32_0 : i32, i32
  }
  func.func @transform_6(%arg0: i32, %arg1: i32) -> (i32, i32) {
    %c0_i32 = arith.constant 0 : i32
    %c0_i32_0 = arith.constant 0 : i32
    return %arg0, %c0_i32 : i32, i32
  }
}

module attributes {stable_mosaic.version = 11 : i64} {
  func.func @_linear_kernel(%arg0: i32, %arg1: i32, %arg2: i32, %arg3: memref<16x32xbf16, #tpu.memory_space<vmem>>, %arg4: memref<32x128xbf16, #tpu.memory_space<vmem>>, %arg5: memref<1x128xf32, #tpu.memory_space<vmem>>, %arg6: memref<16x128xf32, #tpu.memory_space<vmem>>, %arg7: memref<16x128xf32, #tpu.memory_space<vmem>>) attributes {dimension_semantics = [#tpu.dimension_semantics<parallel>, #tpu.dimension_semantics<parallel>, #tpu.dimension_semantics<arbitrary>], iteration_bounds = array<i64: 1, 1, 1>, scalar_prefetch = 0 : i64, scratch_operands = 1 : i64, tpu.core_type = #tpu.core_type<tc>, window_params = [{transform_indices = @transform_0, window_bounds = array<i64: 16, 32>}, {transform_indices = @transform_1, window_bounds = array<i64: 32, 128>}, {transform_indices = @transform_2, window_bounds = array<i64: 1, 128>}, {transform_indices = @transform_3, window_bounds = array<i64: 16, 128>}]} {
    %c0_i32 = arith.constant 0 : i32
    %0 = arith.cmpi eq, %arg2, %c0_i32 : i32
    %1 = arith.extui %0 : i1 to i32
    %c0_i32_0 = arith.constant 0 : i32
    %2 = arith.cmpi ne, %1, %c0_i32_0 : i32
    scf.if %2 {
      %cst_10 = arith.constant 0.000000e+00 : f32
      %12 = vector.broadcast %cst_10 : f32 to vector<16x128xf32>
      %c0_11 = arith.constant 0 : index
      %c0_12 = arith.constant 0 : index
      %13 = vector.load %arg7[%c0_11, %c0_12] : memref<16x128xf32, #tpu.memory_space<vmem>>, vector<16x128xf32>
      tpu.vector_store %arg7[%c0_11, %c0_12], %12 {strides = array<i32>} : memref<16x128xf32, #tpu.memory_space<vmem>>, vector<16x128xf32>,
    } else {
    }
    %c0 = arith.constant 0 : index
    %c0_1 = arith.constant 0 : index
    %3 = vector.load %arg7[%c0, %c0_1] : memref<16x128xf32, #tpu.memory_space<vmem>>, vector<16x128xf32>
    %c0_2 = arith.constant 0 : index
    %c0_3 = arith.constant 0 : index
    %4 = vector.load %arg3[%c0_2, %c0_3] : memref<16x32xbf16, #tpu.memory_space<vmem>>, vector<16x32xbf16>
    %c0_4 = arith.constant 0 : index
    %c0_5 = arith.constant 0 : index
    %5 = vector.load %arg4[%c0_4, %c0_5] : memref<32x128xbf16, #tpu.memory_space<vmem>>, vector<32x128xbf16>
    %cst = arith.constant dense<0.000000e+00> : vector<16x128xf32>
    %6 = tpu.matmul %4, %5, %cst {dimension_numbers = #tpu.dot_dimension_numbers<[1], [0], [0], [1], [0, 0, 1, 1], [], []>} : vector<16x32xbf16>, vector<32x128xbf16>, vector<16x128xf32> -> vector<16x128xf32>
    %7 = arith.addf %3, %6 : vector<16x128xf32>
    %c0_6 = arith.constant 0 : index
    %c0_7 = arith.constant 0 : index
    %8 = vector.load %arg7[%c0_6, %c0_7] : memref<16x128xf32, #tpu.memory_space<vmem>>, vector<16x128xf32>
    tpu.vector_store %arg7[%c0_6, %c0_7], %7 {strides = array<i32>} : memref<16x128xf32, #tpu.memory_space<vmem>>, vector<16x128xf32>,
    %c0_i32_8 = arith.constant 0 : i32
    %9 = arith.cmpi eq, %arg2, %c0_i32_8 : i32
    %10 = arith.extui %9 : i1 to i32
    %c0_i32_9 = arith.constant 0 : i32
    %11 = arith.cmpi ne, %10, %c0_i32_9 : i32
    scf.if %11 {
      %c0_10 = arith.constant 0 : index
      %c0_11 = arith.constant 0 : index
      %12 = vector.load %arg7[%c0_10, %c0_11] : memref<16x128xf32, #tpu.memory_space<vmem>>, vector<16x128xf32>
      %c0_12 = arith.constant 0 : index
      %c0_13 = arith.constant 0 : index
      %13 = vector.load %arg5[%c0_12, %c0_13] : memref<1x128xf32, #tpu.memory_space<vmem>>, vector<1x128xf32>
      %14 = vector.broadcast %13 : vector<1x128xf32> to vector<16x128xf32>
      %15 = arith.addf %12, %14 : vector<16x128xf32>
      %c0_14 = arith.constant 0 : index
      %c0_15 = arith.constant 0 : index
      %16 = vector.load %arg6[%c0_14, %c0_15] : memref<16x128xf32, #tpu.memory_space<vmem>>, vector<16x128xf32>
      tpu.vector_store %arg6[%c0_14, %c0_15], %15 {strides = array<i32>} : memref<16x128xf32, #tpu.memory_space<vmem>>, vector<16x128xf32>,
    } else {
    }
    return
  }
  func.func @transform_0(%arg0: i32, %arg1: i32, %arg2: i32) -> (i32, i32) {
    %c0_i32 = arith.constant 0 : i32
    return %arg0, %arg2 : i32, i32
  }
  func.func @transform_1(%arg0: i32, %arg1: i32, %arg2: i32) -> (i32, i32) {
    %c0_i32 = arith.constant 0 : i32
    return %arg2, %arg1 : i32, i32
  }
  func.func @transform_2(%arg0: i32, %arg1: i32, %arg2: i32) -> (i32, i32) {
    %c0_i32 = arith.constant 0 : i32
    %c0_i32_0 = arith.constant 0 : i32
    return %c0_i32, %arg1 : i32, i32
  }
  func.func @transform_3(%arg0: i32, %arg1: i32, %arg2: i32) -> (i32, i32) {
    %c0_i32 = arith.constant 0 : i32
    return %arg0, %arg1 : i32, i32
  }
}

</mosaic_0001>

<bundles_post_ra>
// kernel: basic_transformer_forward.14
= control target key start
LH: loop header
LB: loop body
LE: loop exit
PB: predicated region body
PF: predicated region fallthrough
CT: control target
= control target key end

     0   :  { %vm46_vm0 = vcmask 261120   ;;  %s146_s1 = inlined_call_operand.vmem [shape: bf16[32,128], index: 1, kind: input, shape index: {}]   ;;  %s147_s2 = inlined_call_operand.vmem [shape: f32[1,128], index: 2, kind: input, shape index: {}]   ;;  %s148_s0 = inlined_call_operand.vmem [shape: bf16[16,32], index: 0, kind: input, shape index: {}]   ;;  %s149_s3 = inlined_call_operand.vmem [shape: bf16[16,128], index: 3, kind: output, shape index: {}]  }
   0x1   :  { %v104_v0 = vld [vmem:[%s146_s1 + $0x8] sm:$0xff]  ;;  %v103_v1 = vld [vmem:[%s146_s1] sm:$0xff] }
   0x2   :  { %56 = vmatpush.bf16.msra.mxu0 %v104_v0  ;;  %v102_v2 = vld [vmem:[%s148_s0] sm:$0xff] }
   0x3   :  { %v110_v4 = vld [vmem:[%s147_s2] ss:$0 sm:$0xff] }
   0x6   :  { %57 = vmatpush.bf16.msra.mxu0 %v103_v1 }
   0x9   :  { %101 = vmatmul.msk.bf16.vlgmr.msra.gmra.mxu0 %vm46_vm0, %v102_v2 }
  0x86   :  { %v59_v3 = vpop.f32.mrf.mxu0 }
  0x87   :  { %v77_v5 = vadd.f32 %v110_v4, %v59_v3 }
  0x89   :  { %v79_v8 = vmax.f32 %v77_v5, 0.0 }
  0x8e   :  { %v61_v6 = vpop.f32.mrf.mxu0 }
  0x8f   :  { %v78_v7 = vadd.f32 %v110_v4, %v61_v6 }
  0x91   :  { %v80_v9 = vmax.f32 %v78_v7, 0.0 }
  0x93   :  { %v108_v10 = vpack.c.bf16 %v80_v9, %v79_v8 }
  0x95   :  { %109 = vst [vmem:[%s149_s3] sm:$0xff] %v108_v10  }

// kernel: basic_transformer_forward.11
= control target key start
LH: loop header
LB: loop body
LE: loop exit
PB: predicated region body
PF: predicated region fallthrough
CT: control target
= control target key end

     0   :  { %vm46_vm0 = vcmask 261120   ;;  %s144_s1 = inlined_call_operand.vmem [shape: bf16[32,128], index: 1, kind: input, shape index: {}]   ;;  %s145_s2 = inlined_call_operand.vmem [shape: f32[1,128], index: 2, kind: input, shape index: {}]   ;;  %s146_s0 = inlined_call_operand.vmem [shape: bf16[16,32], index: 0, kind: input, shape index: {}]   ;;  %s147_s3 = inlined_call_operand.vmem [shape: bf16[16,128], index: 3, kind: output, shape index: {}]  }
   0x1   :  { %v102_v0 = vld [vmem:[%s144_s1 + $0x8] sm:$0xff]  ;;  %v101_v1 = vld [vmem:[%s144_s1] sm:$0xff] }
   0x2   :  { %56 = vmatpush.bf16.msra.mxu0 %v102_v0  ;;  %v100_v2 = vld [vmem:[%s146_s0] sm:$0xff] }
   0x3   :  { %v108_v4 = vld [vmem:[%s145_s2] ss:$0 sm:$0xff] }
   0x6   :  { %57 = vmatpush.bf16.msra.mxu0 %v101_v1 }
   0x9   :  { %99 = vmatmul.msk.bf16.vlgmr.msra.gmra.mxu0 %vm46_vm0, %v100_v2 }
  0x86   :  { %v59_v3 = vpop.f32.mrf.mxu0 }
  0x87   :  { %v77_v6 = vadd.f32 %v108_v4, %v59_v3 }
  0x8e   :  { %v61_v5 = vpop.f32.mrf.mxu0 }
  0x8f   :  { %v78_v7 = vadd.f32 %v108_v4, %v61_v5 }
  0x91   :  { %v106_v8 = vpack.c.bf16 %v78_v7, %v77_v6 }
  0x93   :  { %107 = vst [vmem:[%s147_s3] sm:$0xff] %v106_v8  }

// kernel: basic_transformer_forward.13
= control target key start
LH: loop header
LB: loop body
LE: loop exit
PB: predicated region body
PF: predicated region fallthrough
CT: control target
= control target key end

     0   :  { %vm28_vm0 = vcmask 261120   ;;  %v179_v1 = vmov 0.0   ;;  %s256_s1 = inlined_call_operand.vmem [shape: bf16[32,32], index: 1, kind: input, shape index: {}]   ;;  %s257_s0 = inlined_call_operand.vmem [shape: bf16[16,32], index: 0, kind: input, shape index: {}]   ;;  %s258_s2 = inlined_call_operand.vmem [shape: f32[1,32], index: 2, kind: input, shape index: {}]   ;;  %s259_s3 = inlined_call_operand.vmem [shape: f32[16,32], index: 3, kind: input, shape index: {}]   ;;  %s260_s4 = inlined_call_operand.vmem [shape: f32[1,32], index: 4, kind: input, shape index: {}]   ;;  %s261_s5 = inlined_call_operand.vmem [shape: f32[1,32], index: 5, kind: input, shape index: {}]   ;;  %s262_s6 = inlined_call_operand.vmem [shape: f32[16,32], index: 6, kind: output, shape index: {}]  }
   0x1   :  { %v170_v0 = vld [vmem:[%s256_s1 + $0x8] sm:$0xff]  ;;  %29 = vst.msk [vmem:[#allocation2] sm:$0xff] %vm28_vm0, %v179_v1  ;;  %v169_v2 = vld [vmem:[%s256_s1] sm:$0xff] }
   0x2   :  { %30 = vst.msk [vmem:[#allocation2 + $0x8] sm:$0xff] %vm28_vm0, %v179_v1  ;;  %66 = vmatpush.bf16.msra.mxu0 %v170_v0  ;;  %v168_v3 = vld [vmem:[%s257_s0] sm:$0xff]  ;;  %v90_v17 = vld [vmem:[%s259_s3 + $0x8] sm:$0xff] }
   0x3   :  { %v172_v8 = vld [vmem:[%s258_s2] ss:$0 sm:$0xff] }
   0x4   :  { %v89_v12 = vld [vmem:[%s259_s3] sm:$0xff] }
   0x5   :  { %v173_v45 = vld [vmem:[%s260_s4] ss:$0 sm:$0xff] }
   0x6   :  { %67 = vmatpush.bf16.msra.mxu0 %v169_v2  ;;  %v174_v48 = vld [vmem:[%s261_s5] ss:$0 sm:$0xff] }
   0x8   :  { %v31_v4 = vld [vmem:[#allocation2] sm:$0xff] }
   0x9   :  { %167 = vmatmul.msk.bf16.vlgmr.msra.gmra.mxu0 %vm28_vm0, %v168_v3  ;;  %v32_v7 = vld [vmem:[#allocation2 + $0x8] sm:$0xff] }
  0x86   :  { %v69_v5 = vpop.f32.mrf.mxu0 }
  0x87   :  { %v74_v6 = vadd.f32 %v69_v5, %v31_v4 }
  0x89   :  { %76 = vst.msk [vmem:[#allocation2] sm:$0xff] %vm28_vm0, %v74_v6 }
  0x8e   :  { %v71_v9 = vpop.f32.mrf.mxu0 }
  0x8f   :  { %v75_v10 = vadd.f32 %v71_v9, %v32_v7 }
  0x90   :  { %v81_v11 = vld [vmem:[#allocation2] sm:$0xff] }
  0x91   :  { %77 = vst.msk [vmem:[#allocation2 + $0x8] sm:$0xff] %vm28_vm0, %v75_v10  ;;  %v87_v13 = vadd.f32 %v172_v8, %v81_v11 }
  0x93   :  { %v91_v14 = vadd.f32 %v89_v12, %v87_v13 }
  0x95   :  { %v93_v15 = vsel %vm28_vm0, %v91_v14, 0.0 }
  0x96   :  { %94 = vadd.xlane.f32.xlu0 %v93_v15 }
  0x98   :  { %v82_v16 = vld [vmem:[#allocation2 + $0x8] sm:$0xff] }
  0x99   :  { %v88_v18 = vadd.f32 %v172_v8, %v82_v16 }
  0x9b   :  { %v92_v19 = vadd.f32 %v90_v17, %v88_v18 }
  0x9d   :  { %v96_v20 = vsel %vm28_vm0, %v92_v19, 0.0 }
  0x9e   :  { %97 = vadd.xlane.f32.xlu0 %v96_v20 }
 0x109   :  { %v95_v21 = vpop.xlane.xlu0 %94 }
 0x10a   :  { %v99_v22 = vmul.f32 0.03125, %v95_v21 }
 0x10c   :  { %v101_v23 = vsub.f32 %v91_v14, %v99_v22 }
 0x10e   :  { %v103_v24 = vmul.f32 %v101_v23, %v101_v23 }
 0x110   :  { %v105_v25 = vsel %vm28_vm0, %v103_v24, 0.0 }
 0x111   :  { %106 = vadd.xlane.f32.xlu1 %v105_v25  ;;  %v98_v26 = vpop.xlane.xlu0 %97 }
 0x112   :  { %v100_v27 = vmul.f32 0.03125, %v98_v26 }
 0x114   :  { %v102_v28 = vsub.f32 %v92_v19, %v100_v27 }
 0x116   :  { %v104_v29 = vmul.f32 %v102_v28, %v102_v28 }
 0x118   :  { %v108_v30 = vsel %vm28_vm0, %v104_v29, 0.0 }
 0x119   :  { %109 = vadd.xlane.f32.xlu1 %v108_v30 }
 0x184   :  { %v107_v31 = vpop.xlane.xlu1 %106 }
 0x185   :  { %v111_v32 = vmul.f32 0.03125, %v107_v31 }
 0x187   :  { %v113_v33 = vadd.f32 1e-05, %v111_v32 }
 0x189   :  { %175 = vrsqrt.f32 %v113_v33  ;;  %vm121_vm2 = vweird.f32 %v113_v33 }
 0x18c   :  { %v110_v34 = vpop.xlane.xlu1 %109 }
 0x18d   :  { %v112_v35 = vmul.f32 0.03125, %v110_v34 }
 0x18f   :  { %v176_v36 = vpop.eup %175  ;;  %v114_v37 = vadd.f32 1e-05, %v112_v35 }
 0x190   :  { %v116_v38 = vmul.f32 %v176_v36, %v113_v33  ;;  %vm122_vm1 = vweird.f32 %v176_v36 }
 0x191   :  { %177 = vrsqrt.f32 %v114_v37  ;;  %vm123_vm3 = vmor %vm121_vm2, %vm122_vm1  ;;  %vm131_vm5 = vweird.f32 %v114_v37 }
 0x192   :  { %v117_v39 = vmul.f32 %v176_v36, %v116_v38 }
 0x194   :  { %v118_v40 = vmul.f32 0.5, %v117_v39 }
 0x196   :  { %v119_v41 = vsub.f32 1.5, %v118_v40 }
 0x197   :  { %v178_v42 = vpop.eup %177 }
 0x198   :  { %v120_v43 = vmul.f32 %v176_v36, %v119_v41  ;;  %v126_v44 = vmul.f32 %v178_v42, %v114_v37  ;;  %vm132_vm4 = vweird.f32 %v178_v42 }
 0x199   :  { %vm133_vm6 = vmor %vm131_vm5, %vm132_vm4 }
 0x19a   :  { %v124_v46 = vsel %vm123_vm3, %v176_v36, %v120_v43  ;;  %v127_v47 = vmul.f32 %v178_v42, %v126_v44 }
 0x19b   :  { %v135_v49 = vmul.f32 %v124_v46, %v101_v23 }
 0x19c   :  { %v128_v50 = vmul.f32 0.5, %v127_v47 }
 0x19d   :  { %v141_v51 = vmul.f32 %v173_v45, %v135_v49 }
 0x19e   :  { %v129_v52 = vsub.f32 1.5, %v128_v50 }
 0x19f   :  { %v147_v53 = vadd.f32 %v174_v48, %v141_v51 }
 0x1a0   :  { %v130_v54 = vmul.f32 %v178_v42, %v129_v52 }
 0x1a1   :  { %149 = vst.msk [vmem:[%s262_s6] sm:$0xff] %vm28_vm0, %v147_v53 }
 0x1a2   :  { %v134_v55 = vsel %vm133_vm6, %v178_v42, %v130_v54 }
 0x1a3   :  { %v136_v56 = vmul.f32 %v134_v55, %v102_v28 }
 0x1a5   :  { %v142_v57 = vmul.f32 %v173_v45, %v136_v56 }
 0x1a7   :  { %v148_v58 = vadd.f32 %v174_v48, %v142_v57 }
 0x1a9   :  { %150 = vst.msk [vmem:[%s262_s6 + $0x8] sm:$0xff] %vm28_vm0, %v148_v58 }

// kernel: basic_transformer_forward.12
= control target key start
LH: loop header
LB: loop body
LE: loop exit
PB: predicated region body
PF: predicated region fallthrough
CT: control target
= control target key end

     0   :  { %s745_s15 = smov 0   ;;  %s747_s16 = smov 0   ;;  %s822_s0 = inlined_call_operand.vmem [shape: bf16[2,4,8,8], index: 0, kind: input, shape index: {}]   ;;  %s823_s1 = inlined_call_operand.vmem [shape: bf16[2,4,8,8], index: 1, kind: input, shape index: {}]   ;;  %s824_s2 = inlined_call_operand.vmem [shape: bf16[2,4,8,8], index: 2, kind: input, shape index: {}]   ;;  %s825_s3 = inlined_call_operand.vmem [shape: f32[2,1,8], index: 3, kind: input, shape index: {}]   ;;  %s826_s4 = inlined_call_operand.vmem [shape: bf16[2,4,8,8], index: 4, kind: output, shape index: {}]  }
   0x1   :  { %s749_s17 = smov 0   ;;  %s751_s18 = smov 0  }
   0x2   :  { %s753_s19 = smov 0  }
   0x3 LB: > { %s29_s20 = sadd.s32 1, %s707_s17  ;;  %s33_s21 = sadd.s32 1, %s711_s18  ;;  %s715_s19 = sphi %s753_s19, %s14_s19   ;;  %s711_s18 = sphi %s751_s18, %s830_s18   ;;  %s707_s17 = sphi %s749_s17, %s829_s17   ;;  %s703_s16 = sphi %s747_s16, %s828_s16   ;;  %s699_s15 = sphi %s745_s15, %s827_s15  }
   0x4   : > { %p31_p0 = scmp.ge.s32.totalorder %s29_s20, 4  ;;  %p611_p1 = scmp.ge.s32.totalorder %s715_s19, 1 }
   0x5   : > { %p241_p2 = scmp.lt.s32.totalorder %s715_s19, 9 }
   0x6   : > { %s832_s20 = smov (%p31_p0, %s29_s20), 0  ;;  %s834_s21 = smov (!%p31_p0, %s33_s21), %s711_s18 }
   0x7   : > { %p242_p3 = pnand %p611_p1, %p241_p2  ;;  %p35_p4 = scmp.ge.s32.totalorder %s834_s21, 2 }
   0x8   : > { %p301_p5 = scmp.lt.s32.totalorder (!%p242_p3), %s703_s16, 1  ;;  %p303_p6 = scmp.lt.s32.totalorder (!%p242_p3), %s699_s15, 3 }
   0x9   : > { %s836_s21 = smov (%p35_p4, %s834_s21), 0  ;;  %245 = sbr.rel (%p242_p3) target bundleno = 631 (0x277), region = 36 }
   0xe   : > { %s838_s16 = smov (!%p301_p5, %s703_s16), 1  ;;  %s840_s15 = smov (!%p303_p6, %s699_s15), 3  ;;  %vm353_vm0 = vcmask 64512   ;;  %vm350_vm1 = vcmask 7168   ;;  %v717_v6 = vmov -1e+30   ;;  %v360_v7 = vlaneseq }
   0xf   : > { %s612_s22 = sshll.u32 %s838_s16, 2  ;;  %s336_s25 = scalar_lea.vmem %s825_s3, %s838_s16  ;;  %351 = vst.msk [vmem:[#allocation2] sm:$0xff] %vm350_vm1, %v717_v6  ;;  %v718_v16 = vmov 0   ;;  %v719_v17 = vmov 0.0   ;;  %vm429_vm3 = vcmask 1043456   ;;  %vm462_vm4 = vcmask 60416  }
  0x10   : > { %s306_s26 = sadd.s32 %s612_s22, %s840_s15  ;;  %v361_v8 = vshrl.u32 %v360_v7, 7  ;;  %v363_v9 = vand.u32 127, %v360_v7  ;;  %v670_v10 = vld [vmem:[%s336_s25] ss:$0 sm:$0xff]  ;;  %667 = vset.pattern.permute.xlu0 %v718_v16  ;;  %668 = vset.pattern.permute.xlu1 %v718_v16  ;;  %352 = vst.msk [vmem:[#allocation3] sm:$0xff] %vm350_vm1, %v719_v17 }
  0x11   : > { %s778_s27 = sshll.u32 %s306_s26, 2  ;;  %669 = vset.pattern.permute.xlu2 %v718_v16  ;;  %354 = vst.msk [vmem:[#allocation4] sm:$0xff] %vm353_vm0, %v719_v17 }
  0x12   : > { %s319_s30 = scalar_lea.vmem %s823_s1, %s778_s27  ;;  %s308_s7 = scalar_lea.vmem %s822_s0, %s778_s27  ;;  %vm367_vm2 = vcmp.gt.s32.totalorder %v363_v9, %v361_v8 }
  0x13   : > { %v359_v0 = vld [vmem:[%s319_s30] sm:$0xf]  ;;  %v372_v11 = vsel %vm367_vm2, -1e+30, %v670_v10  ;;  %s330_s10 = scalar_lea.vmem %s824_s2, %s778_s27  ;;  %s344_s13 = scalar_lea.vmem %s826_s4, %s778_s27 }
  0x14   : > { %v355_v1 = vld [vmem:[%s308_s7] sm:$0xf]  ;;  %v378_v2 = vsel %vm353_vm0, %v359_v0, 0 }
  0x15   : > { %v356_v3 = vunpack.c.l.bf16 %v355_v1  ;;  %387 = vmatpush.bf16.xpose.msra.mxu0 %v378_v2  ;;  %v425_v22 = vld [vmem:[%s330_s10] sm:$0xf] }
  0x16   : > { %v393_v18 = vld [vmem:[#allocation2] sm:$0xff]  ;;  %v431_v23 = vsel %vm429_vm3, %v425_v22, 0 }
  0x17   : > { %v357_v4 = vmul.f32 0.35351563, %v356_v3  ;;  %440 = vmatpush.bf16.msra.mxu1 %v431_v23  ;;  %v409_v32 = vld [vmem:[#allocation3] sm:$0xff] }
  0x18   : > { %v417_v40 = vld [vmem:[#allocation4] sm:$0xff] }
  0x19   : > { %v358_v5 = vpack.c.bf16 %v357_v4, %v357_v4 }
  0x1c   : > { %620 = vmatmul.msk.bf16.vlgmr.msra.gmra.mxu0 %vm353_vm0, %v358_v5 }
  0x99   : > { %v389_v12 = vpop.f32.mrf.mxu0 }
  0x9a   : > { %v390_v13 = vadd.f32 %v389_v12, %v372_v11 }
  0x9c   : > { %v394_v14 = vsel %vm353_vm0, %v390_v13, -inf }
  0x9d   : > { %395 = vmax.xlane.f32.xlu0 %v394_v14 }
  0xa1   : > { %v391_v15 = vpop.f32.mrf.mxu0 }
 0x110   : > { %v396_v19 = vpop.xlane.xlu0 %395 }
 0x111   : > { %v397_v20 = vmax.f32 %v393_v18, %v396_v19 }
 0x113   : > { %v398_v21 = vsub.f32 %v393_v18, %v397_v20  ;;  %448 = vst.msk [vmem:[#allocation2] sm:$0xff] %vm350_vm1, %v397_v20  ;;  %403 = vperm.xlu0 %667, %v397_v20  }
 0x115   : > { %v399_v30 = vmul.f32 1.442695, %v398_v21 }
 0x185   : > { %v404_v24 = vpop.permute.xlu0 %403 }
 0x186   : > { %v406_v25 = vsub.f32 %v390_v13, %v404_v24 }
 0x188   : > { %v407_v26 = vmul.f32 1.442695, %v406_v25 }
 0x18a   : > { %671 = vpow2.f32 %v407_v26 }
 0x18b   : > { %673 = vpow2.f32 %v399_v30 }
 0x190   : > { %v672_v27 = vpop.eup %671 }
 0x191   : > { %v411_v28 = vsel %vm353_vm0, %v672_v27, 0.0  ;;  %v424_v29 = vpack.c.bf16 %v672_v27, %v672_v27  ;;  %v674_v31 = vpop.eup %673 }
 0x192   : > { %412 = vadd.xlane.f32.xlu1 %v411_v28  ;;  %v410_v33 = vmul.f32 %v674_v31, %v409_v32 }
 0x193   : > { %621 = vmatmul.msk.bf16.vlgmr.msra.gmra.mxu1 %vm353_vm0, %v424_v29 }
 0x1ab   : > { %420 = vperm.xlu1 %668, %v674_v31  }
 0x205   : > { %v413_v34 = vpop.xlane.xlu1 %412 }
 0x206   : > { %v414_v35 = vadd.f32 %v413_v34, %v410_v33 }
 0x208   : > { %416 = vst.msk [vmem:[#allocation3] sm:$0xff] %vm350_vm1, %v414_v35 }
 0x20f   : > { %v453_v36 = vld [vmem:[#allocation3] sm:$0xff] }
 0x210   : > { %v442_v37 = vpop.f32.mrf.mxu1  ;;  %675 = vrcp.f32 %v453_v36 }
 0x216   : > { %v676_v38 = vpop.eup %675 }
 0x217   : > { %457 = vperm.xlu2 %669, %v676_v38  }
 0x218   : > { %v444_v39 = vpop.f32.mrf.mxu1 }
 0x21d   : > { %v421_v41 = vpop.permute.xlu1 %420 }
 0x21e   : > { %v423_v42 = vmul.f32 %v421_v41, %v417_v40 }
 0x220   : > { %v446_v43 = vadd.f32 %v442_v37, %v423_v42 }
 0x222   : > { %447 = vst.msk [vmem:[#allocation4] sm:$0xff] %vm353_vm0, %v446_v43 }
 0x229   : > { %v452_v44 = vld [vmem:[#allocation4] sm:$0xff] }
 0x271   : > { %v458_v45 = vpop.permute.xlu2 %457 }
 0x272   : > { %v460_v46 = vmul.f32 %v458_v45, %v452_v44 }
 0x274   : > { %v461_v47 = vpack.c.bf16 %v460_v46, %v460_v46 }
 0x276   : > { %463 = vst.msk [vmem:[%s344_s13] sm:$0xf] %vm462_vm4, %v461_v47 }
 0x277 PF: > { %s14_s19 = sadd.s32 1, %s715_s19   ;;  %s827_s15 = smov %s707_s17 }
 0x278   : > { %p11_p7 = scmp.ge.s32.totalorder %s14_s19, 10   ;;  %s828_s16 = smov %s711_s18 }
 0x279   : > { %s829_s17 = smov %s832_s20  ;;  %s830_s18 = smov %s836_s21 }
 0x27a   :  { %13 = sbr.rel (!%p11_p7) target bundleno = 3 (0x3), region = 83 }

// kernel: basic_transformer_forward.15
= control target key start
LH: loop header
LB: loop body
LE: loop exit
PB: predicated region body
PF: predicated region fallthrough
CT: control target
= control target key end

     0   :  { %vm28_vm0 = vcmask 261120   ;;  %v206_v1 = vmov 0.0   ;;  %vm72_vm1 = vcmask 523264   ;;  %s288_s1 = inlined_call_operand.vmem [shape: bf16[64,32], index: 1, kind: input, shape index: {}]   ;;  %s289_s0 = inlined_call_operand.vmem [shape: bf16[16,64], index: 0, kind: input, shape index: {}]   ;;  %s290_s2 = inlined_call_operand.vmem [shape: f32[1,32], index: 2, kind: input, shape index: {}]   ;;  %s291_s3 = inlined_call_operand.vmem [shape: f32[16,32], index: 3, kind: input, shape index: {}]   ;;  %s292_s4 = inlined_call_operand.vmem [shape: f32[1,32], index: 4, kind: input, shape index: {}]   ;;  %s293_s5 = inlined_call_operand.vmem [shape: f32[1,32], index: 5, kind: input, shape index: {}]   ;;  %s294_s6 = inlined_call_operand.vmem [shape: f32[16,32], index: 6, kind: output, shape index: {}]  }
   0x1   :  { %v197_v0 = vld [vmem:[%s288_s1 + $0x18] sm:$0xff]  ;;  %29 = vst.msk [vmem:[#allocation2] sm:$0xff] %vm28_vm0, %v206_v1  ;;  %v196_v2 = vld [vmem:[%s288_s1 + $0x10] sm:$0xff]  ;;  %v195_v3 = vld [vmem:[%s288_s1 + $0x8] sm:$0xff] }
   0x2   :  { %30 = vst.msk [vmem:[#allocation2 + $0x8] sm:$0xff] %vm28_vm0, %v206_v1  ;;  %80 = vmatpush.bf16.msra.mxu0 %v197_v0  ;;  %v194_v4 = vld [vmem:[%s288_s1] sm:$0xff]  ;;  %v107_v19 = vld [vmem:[%s291_s3 + $0x8] sm:$0xff] }
   0x3   :  { %v193_v5 = vld [vmem:[%s289_s0] sm:$0xff] }
   0x4   :  { %v199_v10 = vld [vmem:[%s290_s2] ss:$0 sm:$0xff] }
   0x5   :  { %v106_v14 = vld [vmem:[%s291_s3] sm:$0xff] }
   0x6   :  { %81 = vmatpush.bf16.msra.mxu0 %v196_v2  ;;  %v200_v47 = vld [vmem:[%s292_s4] ss:$0 sm:$0xff] }
   0x7   :  { %v201_v50 = vld [vmem:[%s293_s5] ss:$0 sm:$0xff] }
   0x8   :  { %v31_v6 = vld [vmem:[#allocation2] sm:$0xff] }
   0x9   :  { %v32_v9 = vld [vmem:[#allocation2 + $0x8] sm:$0xff] }
   0xa   :  { %82 = vmatpush.bf16.msra.mxu0 %v195_v3 }
   0xe   :  { %83 = vmatpush.bf16.msra.mxu0 %v194_v4 }
  0x11   :  { %192 = vmatmul.msk.bf16.vlgmr.msra.gmra.mxu0 %vm72_vm1, %v193_v5 }
  0x8e   :  { %v85_v7 = vpop.f32.mrf.mxu0 }
  0x8f   :  { %v90_v8 = vadd.f32 %v85_v7, %v31_v6 }
  0x91   :  { %93 = vst.msk [vmem:[#allocation2] sm:$0xff] %vm28_vm0, %v90_v8 }
  0x96   :  { %v87_v11 = vpop.f32.mrf.mxu0 }
  0x97   :  { %v91_v12 = vadd.f32 %v87_v11, %v32_v9 }
  0x98   :  { %v98_v13 = vld [vmem:[#allocation2] sm:$0xff] }
  0x99   :  { %94 = vst.msk [vmem:[#allocation2 + $0x8] sm:$0xff] %vm28_vm0, %v91_v12  ;;  %v104_v15 = vadd.f32 %v199_v10, %v98_v13 }
  0x9b   :  { %v108_v16 = vadd.f32 %v106_v14, %v104_v15 }
  0x9d   :  { %v110_v17 = vsel %vm28_vm0, %v108_v16, 0.0 }
  0x9e   :  { %111 = vadd.xlane.f32.xlu0 %v110_v17 }
  0xa0   :  { %v99_v18 = vld [vmem:[#allocation2 + $0x8] sm:$0xff] }
  0xa1   :  { %v105_v20 = vadd.f32 %v199_v10, %v99_v18 }
  0xa3   :  { %v109_v21 = vadd.f32 %v107_v19, %v105_v20 }
  0xa5   :  { %v113_v22 = vsel %vm28_vm0, %v109_v21, 0.0 }
  0xa6   :  { %114 = vadd.xlane.f32.xlu0 %v113_v22 }
 0x111   :  { %v112_v23 = vpop.xlane.xlu0 %111 }
 0x112   :  { %v116_v24 = vmul.f32 0.03125, %v112_v23 }
 0x114   :  { %v118_v25 = vsub.f32 %v108_v16, %v116_v24 }
 0x116   :  { %v120_v26 = vmul.f32 %v118_v25, %v118_v25 }
 0x118   :  { %v122_v27 = vsel %vm28_vm0, %v120_v26, 0.0 }
 0x119   :  { %123 = vadd.xlane.f32.xlu1 %v122_v27  ;;  %v115_v28 = vpop.xlane.xlu0 %114 }
 0x11a   :  { %v117_v29 = vmul.f32 0.03125, %v115_v28 }
 0x11c   :  { %v119_v30 = vsub.f32 %v109_v21, %v117_v29 }
 0x11e   :  { %v121_v31 = vmul.f32 %v119_v30, %v119_v30 }
 0x120   :  { %v125_v32 = vsel %vm28_vm0, %v121_v31, 0.0 }
 0x121   :  { %126 = vadd.xlane.f32.xlu1 %v125_v32 }
 0x18c   :  { %v124_v33 = vpop.xlane.xlu1 %123 }
 0x18d   :  { %v128_v34 = vmul.f32 0.03125, %v124_v33 }
 0x18f   :  { %v130_v35 = vadd.f32 1e-05, %v128_v34 }
 0x191   :  { %202 = vrsqrt.f32 %v130_v35  ;;  %vm138_vm3 = vweird.f32 %v130_v35 }
 0x194   :  { %v127_v36 = vpop.xlane.xlu1 %126 }
 0x195   :  { %v129_v37 = vmul.f32 0.03125, %v127_v36 }
 0x197   :  { %v203_v38 = vpop.eup %202  ;;  %v131_v39 = vadd.f32 1e-05, %v129_v37 }
 0x198   :  { %v133_v40 = vmul.f32 %v203_v38, %v130_v35  ;;  %vm139_vm2 = vweird.f32 %v203_v38 }
 0x199   :  { %204 = vrsqrt.f32 %v131_v39  ;;  %vm140_vm4 = vmor %vm138_vm3, %vm139_vm2  ;;  %vm148_vm6 = vweird.f32 %v131_v39 }
 0x19a   :  { %v134_v41 = vmul.f32 %v203_v38, %v133_v40 }
 0x19c   :  { %v135_v42 = vmul.f32 0.5, %v134_v41 }
 0x19e   :  { %v136_v43 = vsub.f32 1.5, %v135_v42 }
 0x19f   :  { %v205_v44 = vpop.eup %204 }
 0x1a0   :  { %v137_v45 = vmul.f32 %v203_v38, %v136_v43  ;;  %v143_v46 = vmul.f32 %v205_v44, %v131_v39  ;;  %vm149_vm5 = vweird.f32 %v205_v44 }
 0x1a1   :  { %vm150_vm7 = vmor %vm148_vm6, %vm149_vm5 }
 0x1a2   :  { %v141_v48 = vsel %vm140_vm4, %v203_v38, %v137_v45  ;;  %v144_v49 = vmul.f32 %v205_v44, %v143_v46 }
 0x1a3   :  { %v152_v51 = vmul.f32 %v141_v48, %v118_v25 }
 0x1a4   :  { %v145_v52 = vmul.f32 0.5, %v144_v49 }
 0x1a5   :  { %v158_v53 = vmul.f32 %v200_v47, %v152_v51 }
 0x1a6   :  { %v146_v54 = vsub.f32 1.5, %v145_v52 }
 0x1a7   :  { %v164_v55 = vadd.f32 %v201_v50, %v158_v53 }
 0x1a8   :  { %v147_v56 = vmul.f32 %v205_v44, %v146_v54 }
 0x1a9   :  { %166 = vst.msk [vmem:[%s294_s6] sm:$0xff] %vm28_vm0, %v164_v55 }
 0x1aa   :  { %v151_v57 = vsel %vm150_vm7, %v205_v44, %v147_v56 }
 0x1ab   :  { %v153_v58 = vmul.f32 %v151_v57, %v119_v30 }
 0x1ad   :  { %v159_v59 = vmul.f32 %v200_v47, %v153_v58 }
 0x1af   :  { %v165_v60 = vadd.f32 %v201_v50, %v159_v59 }
 0x1b1   :  { %167 = vst.msk [vmem:[%s294_s6 + $0x8] sm:$0xff] %vm28_vm0, %v165_v60 }

// kernel: basic_transformer_forward.21
= control target key start
LH: loop header
LB: loop body
LE: loop exit
PB: predicated region body
PF: predicated region fallthrough
CT: control target
= control target key end

     0   :  { %vm46_vm0 = vcmask 261120   ;;  %s140_s1 = inlined_call_operand.vmem [shape: bf16[32,128], index: 1, kind: input, shape index: {}]   ;;  %s141_s2 = inlined_call_operand.vmem [shape: f32[1,128], index: 2, kind: input, shape index: {}]   ;;  %s142_s0 = inlined_call_operand.vmem [shape: bf16[16,32], index: 0, kind: input, shape index: {}]   ;;  %s143_s3 = inlined_call_operand.vmem [shape: f32[16,128], index: 3, kind: output, shape index: {}]  }
   0x1   :  { %v100_v0 = vld [vmem:[%s140_s1 + $0x8] sm:$0xff]  ;;  %v99_v1 = vld [vmem:[%s140_s1] sm:$0xff] }
   0x2   :  { %56 = vmatpush.bf16.msra.mxu0 %v100_v0  ;;  %v98_v2 = vld [vmem:[%s142_s0] sm:$0xff] }
   0x3   :  { %v101_v3 = vld [vmem:[%s141_s2] ss:$0 sm:$0xff] }
   0x6   :  { %57 = vmatpush.bf16.msra.mxu0 %v99_v1 }
   0x9   :  { %97 = vmatmul.msk.bf16.vlgmr.msra.gmra.mxu0 %vm46_vm0, %v98_v2 }
  0x86   :  { %v59_v4 = vpop.f32.mrf.mxu0 }
  0x87   :  { %v77_v5 = vadd.f32 %v101_v3, %v59_v4 }
  0x89   :  { %79 = vst [vmem:[%s143_s3] sm:$0xff] %v77_v5 }
  0x8e   :  { %v61_v6 = vpop.f32.mrf.mxu0 }
  0x8f   :  { %v78_v7 = vadd.f32 %v101_v3, %v61_v6 }
  0x91   :  { %80 = vst [vmem:[%s143_s3 + $0x8] sm:$0xff] %v78_v7 }

</bundles_post_ra>
